<compile_context>
chip_gen: v5e
topology: v5e:2x2
jax: 0.10.0
libtpu: 0.0.40
codegen_flags: <defaults>
</compile_context>

<pallas_src>
import functools

import jax
import jax.numpy as jnp
from jax import lax
from jax.experimental import pallas as pl
from jax.experimental.pallas import tpu as pltpu

LANES = 128


def _slab_layout(D, F, T, N):
    """Row/col offsets of every segment inside the packed (4*D, 128) weight slab."""
    assert 2 * F <= LANES, "merged [fc1 | fc2] must fit one 128-lane band"
    assert T + N + 2 <= D, "pos embeddings + biases must fit under the conv_wf rows"
    assert 2 * D + 2 * T + 2 <= LANES, "shift matrices + amplifier cols overflow lanes"
    assert F >= T and F + 1 <= 3 * D and 2 * D + F <= LANES, "bfc1/v_amp placement overflow"
    lay = {
        "conv_w": (0, 0),                  # (3D, D)  [W0; W1; W2] stacked on rows
        "wb":     (0, D),                  # (D, D)   TextGnn bilinear (transposed)
        "wl":     (D, D),                  # (D, D)   TextGnn linear (transposed)
        "vpos":   (2 * D, D),              # (T, D)   video positional embedding
        "tpos":   (2 * D + T, D),          # (N, D)   text positional embedding
        "conv_b": (2 * D + T + N, D),      # (1, D)
        "bl":     (2 * D + T + N + 1, D),  # (1, D)
        "s_dn":   (0, 2 * D),              # (T, T)   x_prev = S_dn @ x
        "s_up":   (0, 2 * D + T),          # (T, T)   x_next = S_up @ x
        "v_amp":  (0, 2 * D + 2 * T),      # (F, 2)   folded amplifier heads
        "bfc1":   (F, 2 * D),              # (1, F)
        "fc":     (3 * D, 0),              # (D, 2F)  [Wfc1 | Wfc2]
    }
    rows = 4 * D
    return lay, rows


def _softmax(x, axis):
    m = jnp.max(x, axis=axis, keepdims=True)
    e = jnp.exp(x - m)
    return e / jnp.sum(e, axis=axis, keepdims=True)


def _jre_cell_kernel(video_ref, text_ref, w_ref, out_ref, *, dims, update_rate):
    f32 = jnp.float32
    D, F, T, N = dims
    lay, _ = _slab_layout(D, F, T, N)

    def w(name, r, c):
        r0, c0 = lay[name]
        return w_ref[r0:r0 + r, c0:c0 + c]

    video = video_ref[...]                                     # (T, D) raw (residual)
    text = text_ref[...]                                       # (N, D) raw (residual)

    # ---------- VideoEncoder: Conv1d(k=3, pad=1) + ReLU (Dropout = identity) ----------
    # Time taps via slab-resident 0/1 shift matrices (no per-step iota/compare/cast);
    # all three taps merged into one K=3D MXU contraction.
    x = video + w("vpos", T, D)
    x_prev = jnp.dot(w("s_dn", T, T), x, preferred_element_type=f32)   # x[t-1], 0-padded
    x_next = jnp.dot(w("s_up", T, T), x, preferred_element_type=f32)   # x[t+1], 0-padded
    xcat = jnp.concatenate([x_prev, x, x_next], axis=1)                # (T, 3D)
    conv = (jnp.dot(xcat, w("conv_w", 3 * D, D), preferred_element_type=f32)
            + w("conv_b", 1, D))
    video_enc = jnp.maximum(conv, 0.0)                                 # (T, D)

    # ---------- TextGnnEncoder ----------
    t = text + w("tpos", N, D)
    ss = jnp.sum(t * t, axis=1, keepdims=True)
    t_n = t * lax.rsqrt(jnp.maximum(ss, 1e-24))                        # F.normalize(p=2, dim=1)
    proj = jnp.dot(t_n, w("wb", D, D), preferred_element_type=f32)
    edges = lax.dot_general(proj, t_n, (((1,), (1,)), ((), ())),
                            preferred_element_type=f32)                # (N, N)
    gate = jax.nn.sigmoid(jnp.mean(edges, axis=1, keepdims=True))      # (N, 1)
    text_enc = gate * (jnp.dot(t_n, w("wl", D, D), preferred_element_type=f32)
                       + w("bl", 1, D))                                # (N, D)

    # ---------- PairInteraction + amplifier heads (output Linear prefolded) ----------
    # fc1/fc2 merged into one lane-dense (T+N, D) @ (D, 2F=128) contraction.
    enc_cat = jnp.concatenate([video_enc, text_enc], axis=0)           # (T+N, D)
    hh = jnp.dot(enc_cat, w("fc", D, 2 * F), preferred_element_type=f32)
    h1 = hh[0:T, 0:F] + w("bfc1", 1, F)                                # (T, F)
    h2 = hh[T:T + N, F:2 * F]                                          # (N, F)
    h = jnp.maximum(h1[:, None, :] + h2[None, :, :], 0.0)              # (T, N, F)
    # Both heads in one MXU contraction; constant offsets were dropped at prepare
    # time (uniform over the (T, N) map -> cancel inside both softmaxes).
    logits = jnp.dot(h.reshape(T * N, F), w("v_amp", F, 2),
                     preferred_element_type=f32).reshape(T, N, 2)

    text_attn = _softmax(logits[:, :, 0:1], axis=1)                    # softmax over N
    video_attn = _softmax(logits[:, :, 1:2], axis=0)                   # softmax over T
    text_ctx = jnp.sum(text_attn * text_enc[None, :, :], axis=1)       # (T, D)
    video_ctx = jnp.sum(video_attn * video_enc[:, None, :], axis=0)    # (N, D)

    r = update_rate
    out_ref[0:T, :] = text_ctx * r + video_enc * (1.0 - r) + video
    out_ref[T:T + N, :] = video_ctx * r + text_enc * (1.0 - r) + text


@functools.partial(jax.jit, static_argnames=("dims", "update_rate"))
def _jre_cell_forward_batched(video, text, w_slab, *, dims, update_rate):
    D, F, T, N = dims
    B = video.shape[0]
    assert video.shape == (B, T, D) and text.shape == (B, N, D)
    rows = w_slab.shape[0]
    kernel = functools.partial(_jre_cell_kernel, dims=dims,
                               update_rate=float(update_rate))

    mm = lambda m, k, n: 2 * m * k * n
    flops_step = (2 * mm(T, T, D) + mm(T, 3 * D, D)            # video conv
                  + 2 * mm(N, D, D) + mm(N, D, N)              # text gnn
                  + mm(T + N, D, 2 * F) + mm(T * N, F, 2)      # interaction + heads
                  + 2 * T * N * (F + D) + 8 * (T + N) * D)     # elementwise / reductions
    cost = pl.CostEstimate(
        flops=B * flops_step,
        transcendentals=B * (2 * T * N + 2 * N),               # softmax exp + sigmoid/rsqrt
        bytes_accessed=4 * (w_slab.size + 2 * B * (T + N) * D),
    )

    out = pl.pallas_call(
        kernel,
        out_shape=jax.ShapeDtypeStruct((B, T + N, D), jnp.float32),
        grid=(B,),
        in_specs=[
            pl.BlockSpec((None, T, D), lambda b: (b, 0, 0)),   # per-step video block
            pl.BlockSpec((None, N, D), lambda b: (b, 0, 0)),   # per-step text block
            pl.BlockSpec((rows, LANES), lambda b: (0, 0)),     # weight slab: VMEM-resident
        ],
        out_specs=pl.BlockSpec((None, T + N, D), lambda b: (b, 0, 0)),
        compiler_params=pltpu.CompilerParams(dimension_semantics=("parallel",)),
        cost_estimate=cost,
    )(video, text, w_slab)
    return out[:, :T, :], out[:, T:, :]


def jre_cell_forward(video, text, w_slab, *, dims, update_rate=0.5):
    """JreCell forward. Accepts one (T,D)/(N,D) pair or a batch (B,T,D)/(B,N,D)."""
    if video.ndim == 2:
        v, t = _jre_cell_forward_batched(video[None], text[None], w_slab,
                                         dims=dims, update_rate=update_rate)
        return v[0], t[0]
    return _jre_cell_forward_batched(video, text, w_slab,
                                     dims=dims, update_rate=update_rate)


def prepare_params(params, vpos, tpos):
    """One-time parameter preprocessing (outside the per-call path).

    * Conv1d weight must be given as (k=3, Din, Dout); a real PyTorch checkpoint
      (Dout, Din, k) needs `w.permute(2, 1, 0)` first (init_params already matches).
    * Folds the interaction output Linear into the two amplifier heads; the
      remaining constant logit offsets are uniform over the (T, N) map and cancel
      inside both softmaxes (valid while softmax runs over full, unmasked T / N).
    * Folds positional embeddings and the Conv1d shift matrices into the slab so
      the kernel has only 3 operands.
    * Packs everything lane-densely into one (4*D, 128) f32 slab (~64 KiB at D=32).
    """
    (conv_w, conv_b, wb_t, wl_t, bl, wfc1_t, bfc1, wfc2_t,
     wout_t, bout, w_ta, b_ta, w_va, b_va) = params
    del bout, b_ta, b_va                    # constant logit offsets: cancel in softmax
    D = conv_w.shape[2]
    assert conv_w.shape == (3, D, D), "conv_w must be (k=3, Din, Dout)"
    F = wfc1_t.shape[1]
    T, N = vpos.shape[0], tpos.shape[0]
    assert vpos.shape == (T, D) and tpos.shape == (N, D)

    lay, rows = _slab_layout(D, F, T, N)
    segs = {
        "conv_w": conv_w.reshape(3 * D, D),                             # [W0; W1; W2]
        "wb": wb_t, "wl": wl_t, "vpos": vpos, "tpos": tpos,
        "conv_b": conv_b.reshape(1, D), "bl": bl.reshape(1, D),
        "s_dn": jnp.eye(T, k=-1, dtype=jnp.float32),                    # x_prev = S_dn @ x
        "s_up": jnp.eye(T, k=1, dtype=jnp.float32),                     # x_next = S_up @ x
        "v_amp": jnp.stack([wout_t @ w_ta, wout_t @ w_va], axis=1),     # (F, 2)
        "bfc1": bfc1.reshape(1, F),
        "fc": jnp.concatenate([wfc1_t, wfc2_t], axis=1),                # (D, 2F)
    }
    w_slab = jnp.zeros((rows, LANES), jnp.float32)
    for name, s in segs.items():
        r0, c0 = lay[name]
        w_slab = w_slab.at[r0:r0 + s.shape[0], c0:c0 + s.shape[1]].set(
            s.astype(jnp.float32))
    return w_slab, (D, F, T, N)


def init_params(key, Dv, Dt, I, F):
    """Deterministic synthetic params (PyTorch-equivalent shapes, input-major)."""
    ks = jax.random.split(key, 12)

    def u(k, shape, fan_in):
        b = 1.0 / (fan_in ** 0.5)
        return jax.random.uniform(k, shape, jnp.float32, -b, b)

    conv_w = u(ks[0], (3, Dv, Dv), 3 * Dv)    # Conv1d weight (Dout,Din,3) -> (k, Din, Dout)
    conv_b = u(ks[1], (1, Dv), 3 * Dv)
    wb_t = u(ks[2], (Dt, Dt), Dt)             # TextGnn bilinear (bias=False), transposed
    wl_t = u(ks[3], (Dt, Dt), Dt)             # TextGnn linear, transposed
    bl = u(ks[4], (1, Dt), Dt)
    wfc1_t = u(ks[5], (Dv, F), Dv)            # PairInteraction fc1 (with bias)
    bfc1 = u(ks[6], (1, F), Dv)
    wfc2_t = u(ks[7], (Dt, F), Dt)            # PairInteraction fc2 (no bias)
    wout_t = u(ks[8], (F, I), F)              # interaction output Linear
    bout = u(ks[9], (I,), F)
    w_ta = u(ks[10], (I,), I)                 # text amplifier Linear(I, 1)
    b_ta = jnp.float32(0.01)
    w_va = u(ks[11], (I,), I)                 # video amplifier Linear(I, 1)
    b_va = jnp.float32(-0.02)
    return (conv_w, conv_b, wb_t, wl_t, bl, wfc1_t, bfc1, wfc2_t,
            wout_t, bout, w_ta, b_ta, w_va, b_va)


def jre_cell_reference(video, text, vpos, tpos, params, *, update_rate=0.5):
    """Plain-JAX reference, mirroring the PyTorch graph 1:1 (materializes imap)."""
    (conv_w, conv_b, wb_t, wl_t, bl, wfc1_t, bfc1, wfc2_t,
     wout_t, bout, w_ta, b_ta, w_va, b_va) = params
    T, Dv = video.shape
    N, Dt = text.shape
    x = video + vpos
    x_prev = jnp.concatenate([jnp.zeros((1, Dv), jnp.float32), x[:-1]], axis=0)
    x_next = jnp.concatenate([x[1:], jnp.zeros((1, Dv), jnp.float32)], axis=0)
    video_enc = jax.nn.relu(x_prev @ conv_w[0] + x @ conv_w[1] + x_next @ conv_w[2] + conv_b)
    t = text + tpos
    t_n = t / jnp.maximum(jnp.linalg.norm(t, axis=1, keepdims=True), 1e-12)
    edges = (t_n @ wb_t) @ t_n.T
    w = jax.nn.sigmoid(jnp.mean(edges, axis=1, keepdims=True))
    text_enc = w * (t_n @ wl_t + bl)
    h1 = video_enc @ wfc1_t + bfc1
    h2 = text_enc @ wfc2_t
    imap = jax.nn.relu(h1[:, None, :] + h2[None, :, :]) @ wout_t + bout   # (T, N, I)
    tl = imap @ w_ta + b_ta
    vl = imap @ w_va + b_va
    text_attn = jax.nn.softmax(tl, axis=1)[..., None]
    video_attn = jax.nn.softmax(vl, axis=0)[..., None]
    text_ctx = jnp.sum(text_attn * text_enc[None, :, :], axis=1)
    video_ctx = jnp.sum(video_attn * video_enc[:, None, :], axis=0)
    r = update_rate
    return (text_ctx * r + video_enc * (1.0 - r) + video,
            video_ctx * r + text_enc * (1.0 - r) + text)


if __name__ == "__main__":
    T, N, D, I = 16, 8, 32, 32      # video_dim = gcn_dims = interaction_dim = 32
    F = 2 * I                       # PairInteraction forward_dim
    B = 4                           # batch of independent (video, text) pairs
    update_rate = 0.5

    key = jax.random.PRNGKey(0)
    k1, k2, k3, k4, kp = jax.random.split(key, 5)
    video = jax.random.normal(k1, (B, T, D), jnp.float32)
    text = jax.random.normal(k2, (B, N, D), jnp.float32)
    vpos = 0.1 * jax.random.normal(k3, (T, D), jnp.float32)
    tpos = 0.1 * jax.random.normal(k4, (N, D), jnp.float32)
    params = init_params(kp, D, D, I, F)
    w_slab, dims = prepare_params(params, vpos, tpos)

    video_out, text_out = jax.block_until_ready(
        jre_cell_forward(video, text, w_slab, dims=dims, update_rate=update_rate))

    refs = [jre_cell_reference(video[b], text[b], vpos, tpos, params,
                               update_rate=update_rate) for b in range(B)]
    ref_v = jnp.stack([r[0] for r in refs])
    ref_t = jnp.stack([r[1] for r in refs])

    assert video_out.shape == (B, T, D) and text_out.shape == (B, N, D)
    assert jnp.allclose(video_out, ref_v, rtol=1e-3, atol=1e-3), \
        float(jnp.max(jnp.abs(video_out - ref_v)))
    assert jnp.allclose(text_out, ref_t, rtol=1e-3, atol=1e-3), \
        float(jnp.max(jnp.abs(text_out - ref_t)))
    print("KERNEL_OK")
</pallas_src>

<mosaic_0001>
module attributes {stable_mosaic.version = 11 : i64} {
  func.func @_jre_cell_kernel(%arg0: i32, %arg1: memref<1x16x32xf32, #tpu.memory_space<vmem>>, %arg2: memref<1x8x32xf32, #tpu.memory_space<vmem>>, %arg3: memref<128x128xf32, #tpu.memory_space<vmem>>, %arg4: memref<1x24x32xf32, #tpu.memory_space<vmem>>) attributes {dimension_semantics = [#tpu.dimension_semantics<parallel>], iteration_bounds = array<i64: 4>, scalar_prefetch = 0 : i64, scratch_operands = 0 : i64, tpu.core_type = #tpu.core_type<tc>, window_params = [{transform_indices = @transform_0, window_bounds = array<i64: 1, 16, 32>}, {transform_indices = @transform_1, window_bounds = array<i64: 1, 8, 32>}, {pipeline_mode = #tpu.pipeline_mode<synchronous>, transform_indices = @transform_2, window_bounds = array<i64: 128, 128>}, {transform_indices = @transform_3, window_bounds = array<i64: 1, 24, 32>}]} {
    %c0 = arith.constant 0 : index
    %c0_0 = arith.constant 0 : index
    %c0_1 = arith.constant 0 : index
    %0 = vector.load %arg1[%c0, %c0_0, %c0_1] : memref<1x16x32xf32, #tpu.memory_space<vmem>>, vector<1x16x32xf32>
    %1 = vector.shape_cast %0 : vector<1x16x32xf32> to vector<16x32xf32>
    %c0_2 = arith.constant 0 : index
    %c0_3 = arith.constant 0 : index
    %c0_4 = arith.constant 0 : index
    %2 = vector.load %arg2[%c0_2, %c0_3, %c0_4] : memref<1x8x32xf32, #tpu.memory_space<vmem>>, vector<1x8x32xf32>
    %3 = vector.shape_cast %2 : vector<1x8x32xf32> to vector<8x32xf32>
    %c64 = arith.constant 64 : index
    %c32 = arith.constant 32 : index
    %4 = vector.load %arg3[%c64, %c32] : memref<128x128xf32, #tpu.memory_space<vmem>>, vector<16x32xf32>
    %5 = arith.addf %1, %4 : vector<16x32xf32>
    %c0_5 = arith.constant 0 : index
    %c64_6 = arith.constant 64 : index
    %6 = vector.load %arg3[%c0_5, %c64_6] : memref<128x128xf32, #tpu.memory_space<vmem>>, vector<16x16xf32>
    %cst = arith.constant dense<0.000000e+00> : vector<16x32xf32>
    %7 = tpu.matmul %6, %5, %cst {dimension_numbers = #tpu.dot_dimension_numbers<[1], [0], [0], [1], [0, 0, 1, 1], [], []>} : vector<16x16xf32>, vector<16x32xf32>, vector<16x32xf32> -> vector<16x32xf32>
    %c0_7 = arith.constant 0 : index
    %c80 = arith.constant 80 : index
    %8 = vector.load %arg3[%c0_7, %c80] : memref<128x128xf32, #tpu.memory_space<vmem>>, vector<16x16xf32>
    %cst_8 = arith.constant dense<0.000000e+00> : vector<16x32xf32>
    %9 = tpu.matmul %8, %5, %cst_8 {dimension_numbers = #tpu.dot_dimension_numbers<[1], [0], [0], [1], [0, 0, 1, 1], [], []>} : vector<16x16xf32>, vector<16x32xf32>, vector<16x32xf32> -> vector<16x32xf32>
    %10 = tpu.concatenate %7, %5, %9 in 1 : vector<16x32xf32>, vector<16x32xf32>, vector<16x32xf32> -> vector<16x96xf32>
    %c0_9 = arith.constant 0 : index
    %c0_10 = arith.constant 0 : index
    %11 = vector.load %arg3[%c0_9, %c0_10] : memref<128x128xf32, #tpu.memory_space<vmem>>, vector<96x32xf32>
    %cst_11 = arith.constant dense<0.000000e+00> : vector<16x32xf32>
    %12 = tpu.matmul %10, %11, %cst_11 {dimension_numbers = #tpu.dot_dimension_numbers<[1], [0], [0], [1], [0, 0, 1, 1], [], []>} : vector<16x96xf32>, vector<96x32xf32>, vector<16x32xf32> -> vector<16x32xf32>
    %c88 = arith.constant 88 : index
    %c32_12 = arith.constant 32 : index
    %13 = vector.load %arg3[%c88, %c32_12] : memref<128x128xf32, #tpu.memory_space<vmem>>, vector<1x32xf32>
    %14 = vector.broadcast %13 : vector<1x32xf32> to vector<16x32xf32>
    %15 = arith.addf %12, %14 : vector<16x32xf32>
    %cst_13 = arith.constant 0.000000e+00 : f32
    %16 = vector.broadcast %cst_13 : f32 to vector<16x32xf32>
    %17 = arith.maximumf %15, %16 : vector<16x32xf32>
    %c80_14 = arith.constant 80 : index
    %c32_15 = arith.constant 32 : index
    %18 = vector.load %arg3[%c80_14, %c32_15] : memref<128x128xf32, #tpu.memory_space<vmem>>, vector<8x32xf32>
    %19 = arith.addf %3, %18 : vector<8x32xf32>
    %20 = arith.mulf %19, %19 : vector<8x32xf32>
    %cst_16 = arith.constant dense<0.000000e+00> : vector<8xf32>
    %21 = vector.multi_reduction <add>, %20, %cst_16 [1] : vector<8x32xf32> to vector<8xf32>
    %22 = vector.shape_cast %21 : vector<8xf32> to vector<8x1xf32>
    %cst_17 = arith.constant 1.000000e-24 : f32
    %23 = vector.broadcast %cst_17 : f32 to vector<8x1xf32>
    %24 = arith.maximumf %22, %23 : vector<8x1xf32>
    %25 = math.rsqrt %24 : vector<8x1xf32>
    %26 = vector.broadcast %25 : vector<8x1xf32> to vector<8x32xf32>
    %27 = arith.mulf %19, %26 : vector<8x32xf32>
    %c0_18 = arith.constant 0 : index
    %c32_19 = arith.constant 32 : index
    %28 = vector.load %arg3[%c0_18, %c32_19] : memref<128x128xf32, #tpu.memory_space<vmem>>, vector<32x32xf32>
    %cst_20 = arith.constant dense<0.000000e+00> : vector<8x32xf32>
    %29 = tpu.matmul %27, %28, %cst_20 {dimension_numbers = #tpu.dot_dimension_numbers<[1], [0], [0], [1], [0, 0, 1, 1], [], []>} : vector<8x32xf32>, vector<32x32xf32>, vector<8x32xf32> -> vector<8x32xf32>
    %cst_21 = arith.constant dense<0.000000e+00> : vector<8x8xf32>
    %30 = tpu.matmul %29, %27, %cst_21 {dimension_numbers = #tpu.dot_dimension_numbers<[1], [1], [0], [0], [0, 0, 1, 0], [], []>} : vector<8x32xf32>, vector<8x32xf32>, vector<8x8xf32> -> vector<8x8xf32>
    %cst_22 = arith.constant dense<0.000000e+00> : vector<8xf32>
    %31 = vector.multi_reduction <add>, %30, %cst_22 [1] : vector<8x8xf32> to vector<8xf32>
    %32 = vector.shape_cast %31 : vector<8xf32> to vector<8x1xf32>
    %cst_23 = arith.constant 8.000000e+00 : f32
    %33 = vector.broadcast %cst_23 : f32 to vector<8x1xf32>
    %34 = arith.divf %32, %33 : vector<8x1xf32>
    %35 = arith.negf %34 : vector<8x1xf32>
    %36 = math.exp %35 : vector<8x1xf32>
    %cst_24 = arith.constant 1.000000e+00 : f32
    %37 = vector.broadcast %cst_24 : f32 to vector<8x1xf32>
    %38 = arith.addf %37, %36 : vector<8x1xf32>
    %39 = arith.divf %37, %38 : vector<8x1xf32>
    %c32_25 = arith.constant 32 : index
    %c32_26 = arith.constant 32 : index
    %40 = vector.load %arg3[%c32_25, %c32_26] : memref<128x128xf32, #tpu.memory_space<vmem>>, vector<32x32xf32>
    %cst_27 = arith.constant dense<0.000000e+00> : vector<8x32xf32>
    %41 = tpu.matmul %27, %40, %cst_27 {dimension_numbers = #tpu.dot_dimension_numbers<[1], [0], [0], [1], [0, 0, 1, 1], [], []>} : vector<8x32xf32>, vector<32x32xf32>, vector<8x32xf32> -> vector<8x32xf32>
    %c89 = arith.constant 89 : index
    %c32_28 = arith.constant 32 : index
    %42 = vector.load %arg3[%c89, %c32_28] : memref<128x128xf32, #tpu.memory_space<vmem>>, vector<1x32xf32>
    %43 = vector.broadcast %42 : vector<1x32xf32> to vector<8x32xf32>
    %44 = arith.addf %41, %43 : vector<8x32xf32>
    %45 = vector.broadcast %39 : vector<8x1xf32> to vector<8x32xf32>
    %46 = arith.mulf %45, %44 : vector<8x32xf32>
    %47 = tpu.concatenate %17, %46 in 0 : vector<16x32xf32>, vector<8x32xf32> -> vector<24x32xf32>
    %c96 = arith.constant 96 : index
    %c0_29 = arith.constant 0 : index
    %48 = vector.load %arg3[%c96, %c0_29] : memref<128x128xf32, #tpu.memory_space<vmem>>, vector<32x128xf32>
    %cst_30 = arith.constant dense<0.000000e+00> : vector<24x128xf32>
    %49 = tpu.matmul %47, %48, %cst_30 {dimension_numbers = #tpu.dot_dimension_numbers<[1], [0], [0], [1], [0, 0, 1, 1], [], []>} : vector<24x32xf32>, vector<32x128xf32>, vector<24x128xf32> -> vector<24x128xf32>
    %50 = vector.extract_strided_slice %49 {offsets = [0, 0], sizes = [16, 64], strides = [1, 1]} : vector<24x128xf32> to vector<16x64xf32>
    %c64_31 = arith.constant 64 : index
    %c64_32 = arith.constant 64 : index
    %51 = vector.load %arg3[%c64_31, %c64_32] : memref<128x128xf32, #tpu.memory_space<vmem>>, vector<1x64xf32>
    %52 = vector.broadcast %51 : vector<1x64xf32> to vector<16x64xf32>
    %53 = arith.addf %50, %52 : vector<16x64xf32>
    %54 = vector.extract_strided_slice %49 {offsets = [16, 64], sizes = [8, 64], strides = [1, 1]} : vector<24x128xf32> to vector<8x64xf32>
    %55 = vector.shape_cast %53 : vector<16x64xf32> to vector<16x1x64xf32>
    %56 = vector.shape_cast %54 : vector<8x64xf32> to vector<1x8x64xf32>
    %57 = vector.broadcast %55 : vector<16x1x64xf32> to vector<16x8x64xf32>
    %58 = vector.broadcast %56 : vector<1x8x64xf32> to vector<16x8x64xf32>
    %59 = arith.addf %57, %58 : vector<16x8x64xf32>
    %cst_33 = arith.constant 0.000000e+00 : f32
    %60 = vector.broadcast %cst_33 : f32 to vector<16x8x64xf32>
    %61 = arith.maximumf %59, %60 : vector<16x8x64xf32>
    %62 = vector.shape_cast %61 : vector<16x8x64xf32> to vector<128x64xf32>
    %c0_34 = arith.constant 0 : index
    %c96_35 = arith.constant 96 : index
    %63 = vector.load %arg3[%c0_34, %c96_35] : memref<128x128xf32, #tpu.memory_space<vmem>>, vector<64x2xf32>
    %cst_36 = arith.constant dense<0.000000e+00> : vector<128x2xf32>
    %64 = tpu.matmul %62, %63, %cst_36 {dimension_numbers = #tpu.dot_dimension_numbers<[1], [0], [0], [1], [0, 0, 1, 1], [], []>} : vector<128x64xf32>, vector<64x2xf32>, vector<128x2xf32> -> vector<128x2xf32>
    %65 = vector.shape_cast %64 : vector<128x2xf32> to vector<16x8x2xf32>
    %66 = vector.extract_strided_slice %65 {offsets = [0, 0, 0], sizes = [16, 8, 1], strides = [1, 1, 1]} : vector<16x8x2xf32> to vector<16x8x1xf32>
    %cst_37 = arith.constant dense<0xFF800000> : vector<16x1xf32>
    %67 = vector.multi_reduction <maximumf>, %66, %cst_37 [1] : vector<16x8x1xf32> to vector<16x1xf32>
    %68 = vector.shape_cast %67 : vector<16x1xf32> to vector<16x1x1xf32>
    %69 = vector.broadcast %68 : vector<16x1x1xf32> to vector<16x8x1xf32>
    %70 = arith.subf %66, %69 : vector<16x8x1xf32>
    %71 = math.exp %70 : vector<16x8x1xf32>
    %cst_38 = arith.constant dense<0.000000e+00> : vector<16x1xf32>
    %72 = vector.multi_reduction <add>, %71, %cst_38 [1] : vector<16x8x1xf32> to vector<16x1xf32>
    %73 = vector.shape_cast %72 : vector<16x1xf32> to vector<16x1x1xf32>
    %74 = vector.broadcast %73 : vector<16x1x1xf32> to vector<16x8x1xf32>
    %75 = arith.divf %71, %74 : vector<16x8x1xf32>
    %76 = vector.extract_strided_slice %65 {offsets = [0, 0, 1], sizes = [16, 8, 1], strides = [1, 1, 1]} : vector<16x8x2xf32> to vector<16x8x1xf32>
    %cst_39 = arith.constant dense<0xFF800000> : vector<8x1xf32>
    %77 = vector.multi_reduction <maximumf>, %76, %cst_39 [0] : vector<16x8x1xf32> to vector<8x1xf32>
    %78 = vector.shape_cast %77 : vector<8x1xf32> to vector<1x8x1xf32>
    %79 = vector.broadcast %78 : vector<1x8x1xf32> to vector<16x8x1xf32>
    %80 = arith.subf %76, %79 : vector<16x8x1xf32>
    %81 = math.exp %80 : vector<16x8x1xf32>
    %cst_40 = arith.constant dense<0.000000e+00> : vector<8x1xf32>
    %82 = vector.multi_reduction <add>, %81, %cst_40 [0] : vector<16x8x1xf32> to vector<8x1xf32>
    %83 = vector.shape_cast %82 : vector<8x1xf32> to vector<1x8x1xf32>
    %84 = vector.broadcast %83 : vector<1x8x1xf32> to vector<16x8x1xf32>
    %85 = arith.divf %81, %84 : vector<16x8x1xf32>
    %86 = vector.shape_cast %46 : vector<8x32xf32> to vector<1x8x32xf32>
    %87 = vector.broadcast %75 : vector<16x8x1xf32> to vector<16x8x32xf32>
    %88 = vector.broadcast %86 : vector<1x8x32xf32> to vector<16x8x32xf32>
    %89 = arith.mulf %87, %88 : vector<16x8x32xf32>
    %cst_41 = arith.constant dense<0.000000e+00> : vector<16x32xf32>
    %90 = vector.multi_reduction <add>, %89, %cst_41 [1] : vector<16x8x32xf32> to vector<16x32xf32>
    %91 = vector.shape_cast %17 : vector<16x32xf32> to vector<16x1x32xf32>
    %92 = vector.broadcast %85 : vector<16x8x1xf32> to vector<16x8x32xf32>
    %93 = vector.broadcast %91 : vector<16x1x32xf32> to vector<16x8x32xf32>
    %94 = arith.mulf %92, %93 : vector<16x8x32xf32>
    %cst_42 = arith.constant dense<0.000000e+00> : vector<8x32xf32>
    %95 = vector.multi_reduction <add>, %94, %cst_42 [0] : vector<16x8x32xf32> to vector<8x32xf32>
    %cst_43 = arith.constant 5.000000e-01 : f32
    %96 = vector.broadcast %cst_43 : f32 to vector<16x32xf32>
    %97 = arith.mulf %90, %96 : vector<16x32xf32>
    %cst_44 = arith.constant 5.000000e-01 : f32
    %98 = vector.broadcast %cst_44 : f32 to vector<16x32xf32>
    %99 = arith.mulf %17, %98 : vector<16x32xf32>
    %100 = arith.addf %97, %99 : vector<16x32xf32>
    %101 = arith.addf %100, %1 : vector<16x32xf32>
    %c0_45 = arith.constant 0 : index
    %c0_46 = arith.constant 0 : index
    %c0_47 = arith.constant 0 : index
    %102 = vector.load %arg4[%c0_45, %c0_46, %c0_47] : memref<1x24x32xf32, #tpu.memory_space<vmem>>, vector<1x16x32xf32>
    %103 = vector.shape_cast %102 : vector<1x16x32xf32> to vector<16x32xf32>
    %104 = vector.shape_cast %101 : vector<16x32xf32> to vector<1x16x32xf32>
    tpu.vector_store %arg4[%c0_45, %c0_46, %c0_47], %104 {strides = array<i32>} : memref<1x24x32xf32, #tpu.memory_space<vmem>>, vector<1x16x32xf32>,
    %cst_48 = arith.constant 5.000000e-01 : f32
    %105 = vector.broadcast %cst_48 : f32 to vector<8x32xf32>
    %106 = arith.mulf %95, %105 : vector<8x32xf32>
    %cst_49 = arith.constant 5.000000e-01 : f32
    %107 = vector.broadcast %cst_49 : f32 to vector<8x32xf32>
    %108 = arith.mulf %46, %107 : vector<8x32xf32>
    %109 = arith.addf %106, %108 : vector<8x32xf32>
    %110 = arith.addf %109, %3 : vector<8x32xf32>
    %c0_50 = arith.constant 0 : index
    %c16 = arith.constant 16 : index
    %c0_51 = arith.constant 0 : index
    %111 = vector.load %arg4[%c0_50, %c16, %c0_51] : memref<1x24x32xf32, #tpu.memory_space<vmem>>, vector<1x8x32xf32>
    %112 = vector.shape_cast %111 : vector<1x8x32xf32> to vector<8x32xf32>
    %113 = vector.shape_cast %110 : vector<8x32xf32> to vector<1x8x32xf32>
    tpu.vector_store %arg4[%c0_50, %c16, %c0_51], %113 {strides = array<i32>} : memref<1x24x32xf32, #tpu.memory_space<vmem>>, vector<1x8x32xf32>,
    return
  }
  func.func @transform_0(%arg0: i32) -> (i32, i32, i32) {
    %c0_i32 = arith.constant 0 : i32
    %c0_i32_0 = arith.constant 0 : i32
    %c0_i32_1 = arith.constant 0 : i32
    return %arg0, %c0_i32, %c0_i32_0 : i32, i32, i32
  }
  func.func @transform_1(%arg0: i32) -> (i32, i32, i32) {
    %c0_i32 = arith.constant 0 : i32
    %c0_i32_0 = arith.constant 0 : i32
    %c0_i32_1 = arith.constant 0 : i32
    return %arg0, %c0_i32, %c0_i32_0 : i32, i32, i32
  }
  func.func @transform_2(%arg0: i32) -> (i32, i32) {
    %c0_i32 = arith.constant 0 : i32
    %c0_i32_0 = arith.constant 0 : i32
    %c0_i32_1 = arith.constant 0 : i32
    return %c0_i32, %c0_i32_0 : i32, i32
  }
  func.func @transform_3(%arg0: i32) -> (i32, i32, i32) {
    %c0_i32 = arith.constant 0 : i32
    %c0_i32_0 = arith.constant 0 : i32
    %c0_i32_1 = arith.constant 0 : i32
    return %arg0, %c0_i32, %c0_i32_0 : i32, i32, i32
  }
}

</mosaic_0001>

<bundles_post_ra>
// kernel: _jre_cell_forward_batched.1
= control target key start
LH: loop header
LB: loop body
LE: loop exit
PB: predicated region body
PF: predicated region fallthrough
CT: control target
= control target key end

     0   :  { %8 = vsyncpa [#allocation3], 0  ;;  %s3608_s0 = inlined_call_operand.hbm [shape: f32[4,16,32], index: 0, kind: input, shape index: {}]   ;;  %s3609_s1 = inlined_call_operand.hbm [shape: f32[4,8,32], index: 1, kind: input, shape index: {}]   ;;  %s3610_s2 = inlined_call_operand.hbm [shape: f32[128,128], index: 2, kind: input, shape index: {}]   ;;  %s3611_s3 = inlined_call_operand.vmem [shape: f32[4,24,32], index: 3, kind: output, shape index: {}]  }
   0x1   :  { %10 = vsyncpa [#allocation3 + $0x1], 0 }
   0x2   :  { %11 = vsyncpa [#allocation5], 0 }
   0x3   :  { %13 = vsyncpa [#allocation5 + $0x1], 0  ;;  %s2602_s12 = smov 0   ;;  %s2604_s13 = smov 0  }
   0x4   :  { %s2606_s14 = smov 0   ;;  %s2608_s15 = smov 0  }
   0x5 LB: > { %s2621_s16 = sadd.s32 4294967295, %s2570_s15   ;;  %p39_p0 = scmp.ne.s32.totalorder %s2562_s13, %s2558_s12  ;;  %s2570_s15 = sphi %s2608_s15, %s3667_s15   ;;  %s2566_s14 = sphi %s2606_s14, %s3666_s14   ;;  %s2562_s13 = sphi %s2604_s13, %s3665_s13   ;;  %s2558_s12 = sphi %s2602_s12, %s3664_s12  }
   0x6   : > { %p40_p1 = scmp.eq.s32.totalorder %s2621_s16, 0  ;;  %p2153_p2 = scmp.ge.s32.totalorder %s2570_s15, 1 }
   0x7   : > { %p123_p3 = scmp.lt.s32.totalorder %s2570_s15, 5  ;;  %s134_s20 = sshll.u32 %s3610_s2, 4  ;;  %s135_s20 = int_to_ptr.hbm [resolvable:$true] %s134_s20 }
   0x8   : > { %p2629_p4 = por %p40_p1, %p39_p0  ;;  %s2572_s22 = smov [#allocation6]  }
   0x9   : > { %p2636_p5 = pnand %p2153_p2, %p123_p3  ;;  %s136_s23 = sshll.u32 %s2572_s22, 4  ;;  %s137_s23 = int_to_ptr.vmem [resolvable:$true] %s136_s23 }
   0xa   : > { %s2645_s24 = sadd.s32 1, %s2570_s15   ;;  %s2573_s25 = smov 128  }
   0xb   : > { %p2224_p6 = pneg %p2636_p5  ;;  %s2574_s26 = smov 8  }
   0xc   : > { %s23_s27 = ssub.s32 %s2570_s15, %s2645_s24  ;;  %s26_s28 = sadd.s32 1, %s2566_s14 }
   0xd   : > { %p2225_p7 = pnand %p2224_p6, %p40_p1  ;;  %p24_p8 = scmp.eq.s32.totalorder %s23_s27, 0 }
   0xe   : > { %p33_p9 = scmp.ne.s32.totalorder %s2566_s14, %s2562_s13  ;;  %p34_p10 = scmp.eq.s32.totalorder %s2570_s15, 0 }
   0xf   : > { %2227 = dma.hbm_to_vmem [thread:$0]  (!%p2225_p7), %s135_s20, 2048, %s137_s23, [#allocation5], %s2573_s25, %s2573_s25, %s2574_s26  }
  0x10   : > { %p2236_p11 = scmp.lt.s32.totalorder %s2570_s15, 4  ;;  %p35_p12 = por %p34_p10, %p33_p9 }
  0x11   : > { %s2658_s29 = scalar_select %p24_p8, %s2566_s14, %s26_s28  }
  0x12   : > { %s2661_s30 = sand.u32 1, %s2566_s14   ;;  %s2198_s5 = sshll.u32 %s2570_s15, 4 }
  0x13   : > { %s2156_s4 = sshll.u32 %s2661_s30, 4  ;;  %s159_s8 = scalar_lea.hbm %s3608_s0, %s2198_s5 }
  0x14   : > { %s154_s9 = scalar_lea.vmem [#allocation2], %s2156_s4  ;;  %s160_s11 = sshll.u32 %s159_s8, 4  ;;  %s161_s11 = int_to_ptr.hbm [resolvable:$true] %s160_s11 }
  0x15   : > { %s162_s10 = sshll.u32 %s154_s9, 4  ;;  %p2668_p13 = pnand %p2236_p11, %p35_p12  ;;  %s163_s10 = int_to_ptr.vmem [resolvable:$true] %s162_s10 }
  0x16   : > { %s172_s18 = sand.u32 1, %s2570_s15   ;;  %s2159_s19 = sshll.u32 %s2661_s30, 3 }
  0x17   : > { %s151_s20 = scalar_lea.sflag [#allocation3], %s2661_s30  ;;  %s2468_s22 = sshra.s32 %s161_s11, 4  ;;  %s2469_s22 = int_to_ptr.hbm [resolvable:$true] %s2468_s22 }
  0x18   : > { %s2470_s23 = scalar_lea.hbm %s2469_s22, 16  ;;  %p2472_p2 = pneg %p2668_p13 }
  0x19   : > { %p2471_p0 = scmp.ne.s32.totalorder %s2469_s22, %s2470_s23  ;;  %s2475_s4 = scalar_lea.hbm %s3608_s0, 64 }
  0x1a   : > { %p2476_p7 = scmp.lt.s32.totalorder %s2469_s22, %s3608_s0  ;;  %p2477_p8 = scmp.lt.s32.totalorder %s2475_s4, %s2470_s23 }
  0x1b   : > { %p2473_p3 = pnand %p2472_p2, %p2471_p0 }
  0x1c   : > { %p2478_p9 = por %p2477_p8, %p2476_p7 }
  0x1d   : > { %p2474_p6 = pneg %p2473_p3 }
  0x1f   : > { %p2479_p10 = pnand %p2478_p9, %p2474_p6 }
  0x21   : > { %2482 = shalt.err (!%p2479_p10)
}
  0x22   : > { %2231 = dma.hbm_to_vmem [thread:$0]  (!%p2668_p13), %s161_s11, 256, %s163_s10, %s151_s20, %s2573_s25, %s2573_s25, %s2574_s26  }
  0x23   : > { %s2160_s30 = sshll.u32 %s2570_s15, 3  ;;  %s176_s27 = scalar_lea.vmem [#allocation4], %s2159_s19 }
  0x24   : > { %s180_s9 = scalar_lea.hbm %s3609_s1, %s2160_s30  ;;  %s184_s28 = sshll.u32 %s176_s27, 4  ;;  %s185_s28 = int_to_ptr.vmem [resolvable:$true] %s184_s28 }
  0x25   : > { %s182_s22 = sshll.u32 %s180_s9, 4  ;;  %s173_s23 = scalar_lea.sflag [#allocation5], %s172_s18  ;;  %s183_s22 = int_to_ptr.hbm [resolvable:$true] %s182_s22 }
  0x26   : > { %s2498_s4 = sshra.s32 %s183_s22, 4  ;;  %s2505_s26 = scalar_lea.hbm %s3609_s1, 32  ;;  %s2499_s4 = int_to_ptr.hbm [resolvable:$true] %s2498_s4 }
  0x27   : > { %s2500_s5 = scalar_lea.hbm %s2499_s4, 8  ;;  %p2506_p3 = scmp.lt.s32.totalorder %s2499_s4, %s3609_s1 }
  0x28   : > { %p2501_p11 = scmp.ne.s32.totalorder %s2499_s4, %s2500_s5  ;;  %p2507_p6 = scmp.lt.s32.totalorder %s2505_s26, %s2500_s5 }
  0x2a   : > { %p2503_p12 = pnand %p2501_p11, %p2472_p2  ;;  %p2508_p7 = por %p2507_p6, %p2506_p3 }
  0x2c   : > { %p2504_p0 = pneg %p2503_p12 }
  0x2e   : > { %p2509_p8 = pnand %p2508_p7, %p2504_p0 }
  0x30   : > { %2512 = shalt.err (!%p2509_p8)
}
  0x31   : > { %2234 = dma.hbm_to_vmem [thread:$0]  (!%p2668_p13), %s183_s22, 128, %s185_s28, %s173_s23  }
  0x32   : > { %193 = sbr.rel (%p2636_p5) target bundleno = 1447 (0x5a7), region = 32 }
  0x37   : > { %s195_s18 = sand.u32 1, %s2562_s13  }
  0x38   : > { %s2162_s19 = sshll.u32 %s195_s18, 4  ;;  %s196_s20 = scalar_lea.sflag [#allocation3], %s195_s18 }
  0x39   : > { %s2709_s6 = scalar_lea.vmem [#allocation2], %s2162_s19 }
  0x3a   : > { %2545 = dma.done.wait (%p2629_p4), %s196_s20, 256  }
  0x3b   : > { %2547 = vsyncadd (%p2629_p4), %s196_s20, 4294967040  ;;  %s205_s30 = sand.u32 1, %s2621_s16   ;;  %s2163_s12 = sshll.u32 %s195_s18, 3 }
  0x3c   : > { %s206_s7 = scalar_lea.sflag [#allocation5], %s205_s30  ;;  %s2716_s8 = scalar_lea.vmem [#allocation4], %s2163_s12 }
  0x3d   : > { %2549 = dma.done.wait (%p2629_p4), %s206_s7, 128  }
  0x3e   : > { %2551 = vsyncadd (%p2629_p4), %s206_s7, 4294967168 }
  0x3f   : > { %2553 = dma.done.wait (%p40_p1), [#allocation5], 2048  }
  0x40   : > { %2555 = vsyncadd (%p40_p1), [#allocation5], 4294965248  ;;  %v2726_v0 = vld [vmem:[#allocation6 + $0x50] sm:$0xff]  ;;  %v2730_v2 = vld [vmem:[#allocation6 + $0x18] sm:$0xff]  ;;  %s2575_s21 = smov 96   ;;  %s2576_s17 = smov 48  }
  0x41   : > { %v2728_v1 = vld [vmem:[#allocation6 + $0x10] sm:$0xff]  ;;  %404 = vrot.lane.b32.xlu0 %v2726_v0, %s2575_s21  ;;  %v2738_v4 = vld [vmem:[#allocation6 + $0x48] sm:$0xff]  ;;  %v2744_v5 = vld [vmem:[#allocation6] sm:$0xff]  ;;  %s2577_s9 = smov 64   ;;  %vm346_vm0 = vcmask 261120   ;;  %vm271_vm1 = vcmask 130048  }
  0x42   : > { %v2736_v3 = vpack.i.bf16 %v2728_v1, %v2730_v2  ;;  %257 = vrot.lane.b32.xlu2 %v2738_v4, %s2575_s21  ;;  %v2746_v6 = vld [vmem:[#allocation6 + $0x8] sm:$0xff]  ;;  %v251_v8 = vld [vmem:[#allocation6 + $0x40] sm:$0xff]  ;;  %v250_v15 = vld [vmem:[%s2716_s8] sm:$0xff]  ;;  %s2578_s27 = smov 32   ;;  %vm349_vm5 = vcmask 523264   ;;  %vm370_vm6 = vcmask 785408  }
  0x43   : > { %v2750_v7 = vpack.i.bf16 %v2744_v5, %v2746_v6  ;;  %v249_v9 = vld [vmem:[%s2709_s6 + $0x8] sm:$0xff]  ;;  %v248_v12 = vld [vmem:[%s2709_s6] sm:$0xff]  ;;  %vm490_vm7 = vcmask 64512   ;;  %vm844_vm13 = vcmask 7168   ;;  %vm1357_vm14 = vcmask 15368   ;;  %p243_p1 = scmp.lt.s32.totalorder %s2621_s16, 3 }
  0x44   : > { %2281 = vrot.lane.b32.xlu1 %v2736_v3, %s2575_s21  ;;  %v523_v29 = vld [vmem:[#allocation6 + $0x30] sm:$0xff]  ;;  %v524_v30 = vld [vmem:[#allocation6 + $0x38] sm:$0xff]  ;;  %v522_v43 = vld [vmem:[#allocation6 + $0x28] sm:$0xff] }
  0x45   : > { %v2770_v31 = vpack.i.bf16 %v523_v29, %v524_v30  ;;  %v363_v35 = vld [vmem:[#allocation6 + $0x58] sm:$0xff]  ;;  %v521_v46 = vld [vmem:[#allocation6 + $0x20] sm:$0xff]  ;;  %s3669_s16 = smov (!%p243_p1, %s2621_s16), 3 }
  0x46   : > { %v2295_v48 = vpack.i.bf16 %v521_v46, %v522_v43  ;;  %v2326_v63 = vld [vmem:[#allocation6 + $0x58] ss:$0 sm:$0xff]  ;;  %s2215_s28 = smul.u32 24, %s3669_s16 }
  0x48   : > { %s3525_s23 = scalar_lea.vmem %s3611_s3, %s2215_s28 }
  0x4a   : > { %255 = vrot.lane.b32.xlu2 %v251_v8, %s2575_s21 }
  0x4c   : > { %2286 = vrot.lane.b32.xlu1 %v2750_v7, %s2575_s21 }
  0x52   : > { %301 = vrot.lane.b32.xlu2 %v2746_v6, %s2576_s17 }
  0x54   : > { %299 = vrot.lane.b32.xlu1 %v2744_v5, %s2576_s17 }
  0x5a   : > { %269 = vrot.lane.b32.xlu2 %v2746_v6, %s2577_s9 }
  0x5c   : > { %267 = vrot.lane.b32.xlu1 %v2744_v5, %s2577_s9 }
  0x9c   : > { %v258_v10 = vpop.permute.xlu2 %257 }
  0x9d   : > { %v262_v11 = vadd.f32 %v258_v10, %v249_v9 }
  0x9f   : > { %321 = vmatpush.msra.mxu1 %v262_v11  ;;  %290 = vmatpush.msra.mxu2 %v262_v11 }
  0xa4   : > { %v256_v13 = vpop.permute.xlu2 %255 }
  0xa5   : > { %v261_v14 = vadd.f32 %v256_v13, %v248_v12  ;;  %v568_v13 = vld [vmem:[#allocation6 + $0x60] sm:$0xff] }
  0xa7   : > { %322 = vmatpush.msra.mxu1 %v261_v14  ;;  %291 = vmatpush.msra.mxu2 %v261_v14 }
  0xa8   : > { %332 = vrot.lane.b32.xlu1 %v261_v14, %s2578_s27  ;;  %v2328_v14 = vld [vmem:[#allocation6 + $0x40] ss:$0 sm:$0xff] }
  0xa9   : > { %381 = vmatpush.msrb.mxu1 %v363_v35 }
  0xab   : > { %382 = vmatpush.msrb.mxu1 %v2726_v0  ;;  %v2327_v0 = vld [vmem:[#allocation6 + $0x59] ss:$0 sm:$0xff] }
  0xac   : > { %v302_v23 = vpop.permute.xlu2 %301 }
  0xad   : > { %383 = vmatpush.msrb.mxu1 %v2738_v4 }
  0xaf   : > { %384 = vmatpush.msrb.mxu1 %v251_v8  ;;  %v570_v8 = vld [vmem:[#allocation6 + $0x70] sm:$0xff] }
  0xb0   : > { %334 = vrot.lane.b32.xlu1 %v262_v11, %s2578_s27  ;;  %v569_v11 = vld [vmem:[#allocation6 + $0x68] sm:$0xff] }
  0xb1   : > { %385 = vmatpush.msrb.mxu1 %v524_v30 }
  0xb3   : > { %v405_v16 = vpop.permute.xlu0 %404  ;;  %386 = vmatpush.msrb.mxu1 %v523_v29 }
  0xb4   : > { %v407_v17 = vadd.f32 %v405_v16, %v250_v15  ;;  %v270_v32 = vpop.permute.xlu2 %269 }
  0xb5   : > { %387 = vmatpush.msrb.mxu1 %v522_v43 }
  0xb6   : > { %v2282_v18 = vpop.permute.xlu1 %2281  ;;  %v408_v19 = vmul.f32 %v407_v17, %v407_v17 }
  0xb7   : > { %v2283_v24 = vunpack.i.l.bf16 %v2282_v18  ;;  %v2284_v25 = vunpack.i.h.bf16 %v2282_v18  ;;  %388 = vmatpush.msrb.mxu1 %v521_v46 }
  0xb8   : > { %v409_v20 = vsel %vm346_vm0, %v408_v19, 0.0  ;;  %2291 = vrot.lane.b32.xlu1 %v2770_v31, %s2575_s21  ;;  %v2579_v19 = vmov 8.0  }
  0xb9   : > { %410 = vadd.xlane.f32.xlu0 %v409_v20  ;;  %459 = vmatpush.msra.mxu3 %v2283_v24 }
  0xba   : > { %389 = vmatpush.msrb.mxu1 %v2730_v2 }
  0xbb   : > { %460 = vmatpush.msra.mxu3 %v2284_v25 }
  0xbc   : > { %390 = vmatpush.msrb.mxu1 %v2728_v1 }
  0xbe   : > { %v2287_v21 = vpop.permute.xlu1 %2286  ;;  %391 = vmatpush.msrb.mxu1 %v2746_v6 }
  0xbf   : > { %v2288_v26 = vunpack.i.l.bf16 %v2287_v21  ;;  %v2289_v27 = vunpack.i.h.bf16 %v2287_v21 }
  0xc0   : > { %392 = vmatpush.msrb.mxu1 %v2744_v5  ;;  %367 = vrot.lane.b32.xlu1 %v2326_v63, %s2575_s21  ;;  %v571_v5 = vld [vmem:[#allocation6 + $0x78] sm:$0xff] }
  0xc1   : > { %461 = vmatpush.msra.mxu3 %v2288_v26 }
  0xc3   : > { %462 = vmatpush.msra.mxu3 %v2289_v27 }
  0xc6   : > { %v300_v22 = vpop.permute.xlu1 %299 }
  0xc7   : > { %2168 = vmatmul.msk.f32.vlgmr.msra.gmra.mxu1 %vm271_vm1, %v300_v22 }
  0xc8   : > { %2306 = vrot.lane.b32.xlu1 %v2295_v48, %s2578_s27  ;;  %593 = vmatpush.msra.mxu1 %v571_v5 }
  0xca   : > { %594 = vmatpush.msra.mxu1 %v570_v8 }
  0xcc   : > { %595 = vmatpush.msra.mxu1 %v569_v11 }
  0xce   : > { %v268_v28 = vpop.permute.xlu1 %267  ;;  %596 = vmatpush.msra.mxu1 %v568_v13 }
  0xcf   : > { %2169 = vmatmul.msk.f32.gmra.mxu1 %vm271_vm1, %v302_v23  ;;  %2166 = vmatmul.msk.f32.vlgmr.msra.gmra.mxu2 %vm271_vm1, %v268_v28 }
  0xd0   : > { %2311 = vrot.lane.b32.xlu1 %v2736_v3, %s2578_s27 }
  0xd7   : > { %2167 = vmatmul.msk.f32.gmra.mxu2 %vm271_vm1, %v270_v32 }
 0x11a   : > { %v333_v49 = vpop.permute.xlu1 %332 }
 0x122   : > { %v335_v50 = vpop.permute.xlu1 %334 }
 0x12a   : > { %v2292_v52 = vpop.permute.xlu1 %2291 }
 0x12b   : > { %v2293_v54 = vunpack.i.l.bf16 %v2292_v52  ;;  %v2294_v56 = vunpack.i.h.bf16 %v2292_v52 }
 0x12c   : > { %v411_v33 = vpop.xlane.xlu0 %410 }
 0x12d   : > { %v412_v34 = vmax.f32 %v411_v33, 1e-24 }
 0x12f   : > { %2329 = vrsqrt.f32 %v412_v34  ;;  %vm419_vm3 = vweird.f32 %v412_v34 }
 0x130   : > { %2331 = vrcp.f32 %v2579_v19 }
 0x132   : > { %v368_v6 = vpop.permute.xlu1 %367 }
 0x135   : > { %v2330_v36 = vpop.eup %2329 }
 0x136   : > { %v414_v37 = vmul.f32 %v2330_v36, %v412_v34  ;;  %vm420_vm2 = vweird.f32 %v2330_v36  ;;  %v2332_v20 = vpop.eup %2331 }
 0x137   : > { %vm421_vm4 = vmor %vm419_vm3, %vm420_vm2  ;;  %v495_v21 = vmul.f32 8.0, %v2332_v20  ;;  %vm499_vm8 = vweird.f32 %v2332_v20 }
 0x138   : > { %v415_v38 = vmul.f32 %v2330_v36, %v414_v37 }
 0x139   : > { %v496_v22 = vsub.f32 1.0, %v495_v21 }
 0x13a   : > { %v416_v39 = vmul.f32 0.5, %v415_v38 }
 0x13b   : > { %v497_v23 = vmul.f32 %v2332_v20, %v496_v22 }
 0x13c   : > { %v417_v40 = vsub.f32 1.5, %v416_v39 }
 0x13d   : > { %v498_v24 = vadd.f32 %v2332_v20, %v497_v23 }
 0x13e   : > { %v418_v41 = vmul.f32 %v2330_v36, %v417_v40 }
 0x13f   : > { %v500_v25 = vsel %vm499_vm8, %v2332_v20, %v498_v24 }
 0x140   : > { %v422_v42 = vsel %vm421_vm4, %v2330_v36, %v418_v41 }
 0x141   : > { %v423_v44 = vmul.f32 %v422_v42, %v407_v17 }
 0x143   : > { %2172 = vmatmul.msk.f32.vlgmr.msra.gmra.mxu3 %vm346_vm0, %v423_v44  ;;  %2173 = vmatpush.xpose.msk.msra.mxu0 %vm346_vm0, %v423_v44 }
 0x144   : > { %v324_v45 = vpop.f32.mrf.mxu1 }
 0x145   : > { %340 = vrot.lane.b32.xlu2 %v324_v45, %s2577_s9  ;;  %v2307_v45 = vpop.permute.xlu1 %2306 }
 0x147   : > { %559 = vmatpush.msrb.mxu0 %v2293_v54 }
 0x149   : > { %560 = vmatpush.msrb.mxu0 %v2294_v56 }
 0x14c   : > { %v327_v47 = vpop.f32.mrf.mxu1 }
 0x14d   : > { %342 = vrot.lane.b32.xlu2 %v327_v47, %s2577_s9 }
 0x152   : > { %v293_v55 = vpop.f32.mrf.mxu2 }
 0x153   : > { %v347_v57 = vsel %vm346_vm0, %v293_v55, %v333_v49  ;;  %v2309_v49 = vunpack.i.h.bf16 %v2307_v45 }
 0x155   : > { %2296 = vrot.lane.b32.xlu2 %v2295_v48, %s2575_s21  ;;  %v2308_v48 = vunpack.i.l.bf16 %v2307_v45 }
 0x15a   : > { %v296_v62 = vpop.f32.mrf.mxu2 }
 0x15b   : > { %v348_v1 = vsel %vm346_vm0, %v296_v62, %v335_v50  ;;  %v2312_v50 = vpop.permute.xlu1 %2311 }
 0x15c   : > { %v2314_v52 = vunpack.i.h.bf16 %v2312_v50 }
 0x15d   : > { %544 = vrot.lane.b32.xlu2 %v2327_v0, %s2575_s21 }
 0x165   : > { %610 = vrot.lane.b32.xlu2 %v2328_v14, %s2577_s9 }
 0x19f   : > { %v341_v51 = vpop.permute.xlu2 %340 }
 0x1a0   : > { %v350_v58 = vsel %vm349_vm5, %v347_v57, %v341_v51 }
 0x1a1   : > { %2170 = vmatmul.msk.f32.vlgmr.msrb.gmra.mxu1 %vm370_vm6, %v350_v58 }
 0x1a7   : > { %v343_v53 = vpop.permute.xlu2 %342 }
 0x1a8   : > { %v351_v2 = vsel %vm349_vm5, %v348_v1, %v343_v53  ;;  %v2313_v53 = vunpack.i.l.bf16 %v2312_v50 }
 0x1a9   : > { %2171 = vmatmul.msk.f32.gmra.mxu1 %vm370_vm6, %v351_v2 }
 0x1af   : > { %v2297_v59 = vpop.permute.xlu2 %2296 }
 0x1b0   : > { %v2298_v60 = vunpack.i.l.bf16 %v2297_v59  ;;  %v2299_v61 = vunpack.i.h.bf16 %v2297_v59 }
 0x1b2   : > { %561 = vmatpush.msrb.mxu0 %v2298_v60 }
 0x1b4   : > { %562 = vmatpush.msrb.mxu0 %v2299_v61 }
 0x1b7   : > { %v545_v36 = vpop.permute.xlu2 %544 }
 0x1bf   : > { %v611_v59 = vpop.permute.xlu2 %610 }
 0x1c6   : > { %v464_v4 = vpop.f32.mrf.mxu3 }
 0x1c7   : > { %2174 = vmatmul.msk.f32.vlgmr.msra.gmra.mxu0 %vm346_vm0, %v464_v4 }
 0x1cf   : > { %2176 = vmatmul.msk.f32.vlgmr.msrb.gmra.mxu0 %vm346_vm0, %v423_v44 }
 0x21e   : > { %v394_v9 = vpop.f32.mrf.mxu1 }
 0x21f   : > { %v395_v10 = vadd.f32 %v394_v9, %v368_v6 }
 0x221   : > { %v2799_v12 = vmax.f32 %v395_v10, 0.0 }
 0x223   : > { %3632 = vst [vmem:[#allocation10_spill] sm:$0xff] %v2799_v12  ;;  %2177 = vmatmul.msk.f32.vlgmr.msra.gmra.mxu1 %vm346_vm0, %v2799_v12 }
 0x226   : > { %v397_v3 = vpop.f32.mrf.mxu1 }
 0x227   : > { %v398_v15 = vadd.f32 %v397_v3, %v368_v6 }
 0x229   : > { %v2804_v16 = vmax.f32 %v398_v15, 0.0 }
 0x22b   : > { %3633 = vst [vmem:[#allocation11_spill] sm:$0xff] %v2804_v16  ;;  %2178 = vmatmul.msk.f32.gmra.mxu1 %vm346_vm0, %v2804_v16 }
 0x244   : > { %v487_v17 = vpop.f32.mrf.mxu0 }
 0x245   : > { %v491_v18 = vsel %vm490_vm7, %v487_v17, 0.0 }
 0x246   : > { %492 = vadd.xlane.f32.xlu0 %v491_v18 }
 0x24c   : > { %v564_v37 = vpop.f32.mrf.mxu0 }
 0x24d   : > { %v565_v40 = vadd.f32 %v564_v37, %v545_v36 }
 0x25a   : > { %2301 = vrot.lane.b32.xlu0 %v2770_v31, %s2578_s27 }
 0x262   : > { %2316 = vrot.lane.b32.xlu0 %v2750_v7, %s2578_s27 }
 0x2a0   : > { %v598_v55 = vpop.f32.mrf.mxu1 }
 0x2a1   : > { %v2817_v60 = vadd.f32 %v611_v59, %v598_v55 }
 0x2a3   : > { %v621_v62 = vrot.slane %v2817_v60, 5  ;;  %v631_v0 = vperm.slane %v2817_v60, 0  ;;  %v617_v5 = vrot.slane %v2817_v60, 1  ;;  %v622_v10 = vrot.slane %v2817_v60, 6 }
 0x2a4   : > { %v618_v22 = vrot.slane %v2817_v60, 2  ;;  %v623_v23 = vrot.slane %v2817_v60, 7  ;;  %v620_v45 = vrot.slane %v2817_v60, 4 }
 0x2a5   : > { %v636_v1 = vperm.slane %v621_v62, 0  ;;  %v632_v15 = vperm.slane %v617_v5, 0  ;;  %v637_v17 = vperm.slane %v622_v10, 0 }
 0x2a8   : > { %v601_v57 = vpop.f32.mrf.mxu1 }
 0x2a9   : > { %v2819_v61 = vadd.f32 %v611_v59, %v601_v57 }
 0x2ab   : > { %v626_v63 = vrot.slane %v2819_v61, 3  ;;  %v627_v11 = vrot.slane %v2819_v61, 4  ;;  %v628_v24 = vrot.slane %v2819_v61, 5  ;;  %v625_v57 = vrot.slane %v2819_v61, 2 }
 0x2ad   : > { %v642_v2 = vperm.slane %v626_v63, 0  ;;  %v643_v18 = vperm.slane %v627_v11, 0  ;;  %v641_v62 = vperm.slane %v625_v57, 0 }
 0x2b9   : > { %v493_v26 = vpop.xlane.xlu0 %492 }
 0x2ba   : > { %v501_v27 = vmul.f32 %v500_v25, %v493_v26 }
 0x2bc   : > { %v2175_v28 = vmul.f32 -1.442695, %v501_v27 }
 0x2be   : > { %2333 = vpow2.f32 %v2175_v28  ;;  %v633_v28 = vperm.slane %v618_v22, 0 }
 0x2c4   : > { %v2334_v29 = vpop.eup %2333 }
 0x2c5   : > { %v505_v30 = vadd.f32 1.0, %v2334_v29  ;;  %v638_v29 = vperm.slane %v623_v23, 0 }
 0x2c7   : > { %2335 = vrcp.f32 %v505_v30  ;;  %v517_v7 = vand.u32 2147483648, %v505_v30  ;;  %v515_v35 = vand.u32 2147483647, %v505_v30  ;;  %vm511_vm10 = vweird.f32 %v505_v30 }
 0x2c9   : > { %v518_v39 = vor.u32 1.1754944e-38, %v517_v7  ;;  %vm516_vm12 = vcmp.eq.f32.partialorder %v515_v35, 8.507059e+37  ;;  %v619_v7 = vrot.slane %v2817_v60, 3 }
 0x2cc   : > { %v2302_v44 = vpop.permute.xlu0 %2301 }
 0x2cd   : > { %v2336_v31 = vpop.eup %2335  ;;  %v2304_v46 = vunpack.i.h.bf16 %v2302_v44  ;;  %v2303_v47 = vunpack.i.l.bf16 %v2302_v44 }
 0x2ce   : > { %v507_v32 = vmul.f32 %v2336_v31, %v505_v30  ;;  %vm512_vm9 = vweird.f32 %v2336_v31  ;;  %v644_v30 = vperm.slane %v628_v24, 0 }
 0x2cf   : > { %vm513_vm11 = vmor %vm511_vm10, %vm512_vm9  ;;  %787 = vmatpush.msra.mxu0 %v2303_v47  ;;  %2199 = vmatpush.msrb.mxu2 %v2303_v47 }
 0x2d0   : > { %v508_v33 = vsub.f32 1.0, %v507_v32  ;;  %2200 = vmatpush.msrb.mxu3 %v2303_v47  ;;  %v630_v47 = vrot.slane %v2819_v61, 7 }
 0x2d1   : > { %788 = vmatpush.msra.mxu0 %v2304_v46  ;;  %2201 = vmatpush.msrb.mxu2 %v2304_v46 }
 0x2d2   : > { %v509_v34 = vmul.f32 %v2336_v31, %v508_v33  ;;  %2202 = vmatpush.msrb.mxu3 %v2304_v46  ;;  %v624_v46 = vrot.slane %v2819_v61, 1 }
 0x2d3   : > { %789 = vmatpush.msra.mxu0 %v2308_v48  ;;  %2203 = vmatpush.msrb.mxu2 %v2308_v48 }
 0x2d4   : > { %v510_v38 = vadd.f32 %v2336_v31, %v509_v34  ;;  %2204 = vmatpush.msrb.mxu3 %v2308_v48  ;;  %v2317_v51 = vpop.permute.xlu0 %2316  ;;  %v629_v34 = vrot.slane %v2819_v61, 6 }
 0x2d5   : > { %790 = vmatpush.msra.mxu0 %v2309_v49  ;;  %2205 = vmatpush.msrb.mxu2 %v2309_v49  ;;  %v2318_v54 = vunpack.i.l.bf16 %v2317_v51  ;;  %v2319_v56 = vunpack.i.h.bf16 %v2317_v51  ;;  %v635_v51 = vperm.slane %v620_v45, 0 }
 0x2d6   : > { %v514_v41 = vsel %vm513_vm11, %v2336_v31, %v510_v38  ;;  %2206 = vmatpush.msrb.mxu3 %v2309_v49  ;;  %v634_v38 = vperm.slane %v619_v7, 0 }
 0x2d7   : > { %v519_v42 = vsel %vm516_vm12, %v518_v39, %v514_v41  ;;  %791 = vmatpush.msra.mxu0 %v2313_v53  ;;  %2207 = vmatpush.msrb.mxu2 %v2313_v53  ;;  %v639_v39 = vperm.slane %v2819_v61, 0 }
 0x2d8   : > { %v2812_v43 = vmul.f32 %v565_v40, %v519_v42  ;;  %2208 = vmatpush.msrb.mxu3 %v2313_v53  ;;  %v645_v40 = vperm.slane %v629_v34, 0  ;;  %v646_v53 = vperm.slane %v630_v47, 0 }
 0x2d9   : > { %792 = vmatpush.msra.mxu0 %v2314_v52  ;;  %2209 = vmatpush.msrb.mxu2 %v2314_v52 }
 0x2da   : > { %3634 = vst [vmem:[#allocation12_spill] sm:$0xff] %v2812_v43  ;;  %2179 = vmatmul.msk.f32.gmra.mxu1 %vm346_vm0, %v2812_v43  ;;  %2210 = vmatpush.msrb.mxu3 %v2314_v52  ;;  %v640_v52 = vperm.slane %v624_v46, 0 }
 0x2db   : > { %793 = vmatpush.msra.mxu0 %v2318_v54  ;;  %2211 = vmatpush.msrb.mxu2 %v2318_v54 }
 0x2dc   : > { %2212 = vmatpush.msrb.mxu3 %v2318_v54 }
 0x2dd   : > { %794 = vmatpush.msra.mxu0 %v2319_v56  ;;  %2213 = vmatpush.msrb.mxu2 %v2319_v56 }
 0x2de   : > { %2214 = vmatpush.msrb.mxu3 %v2319_v56 }
 0x357   : > { %v604_v58 = vpop.f32.mrf.mxu1 }
 0x358   : > { %664 = vrot.lane.b32.xlu2 %v604_v58, %s2577_s9 }
 0x3b2   : > { %v2824_v4 = vpop.permute.xlu2 %664 }
 0x3b3   : > { %v667_v6 = vadd.f32 %v2824_v4, %v631_v0  ;;  %v672_v8 = vadd.f32 %v2824_v4, %v636_v1  ;;  %v678_v9 = vadd.f32 %v2824_v4, %v642_v2  ;;  %v668_v19 = vadd.f32 %v2824_v4, %v632_v15 }
 0x3b4   : > { %v673_v20 = vadd.f32 %v2824_v4, %v637_v17  ;;  %v679_v21 = vadd.f32 %v2824_v4, %v643_v18  ;;  %v669_v31 = vadd.f32 %v2824_v4, %v633_v28  ;;  %v674_v32 = vadd.f32 %v2824_v4, %v638_v29 }
 0x3b5   : > { %v683_v13 = vmax.f32 %v667_v6, 0.0  ;;  %v688_v14 = vmax.f32 %v672_v8, 0.0  ;;  %v694_v3 = vmax.f32 %v678_v9, 0.0  ;;  %v684_v25 = vmax.f32 %v668_v19, 0.0 }
 0x3b6   : > { %v689_v26 = vmax.f32 %v673_v20, 0.0  ;;  %v695_v27 = vmax.f32 %v679_v21, 0.0  ;;  %v680_v33 = vadd.f32 %v2824_v4, %v644_v30  ;;  %v685_v35 = vmax.f32 %v669_v31, 0.0 }
 0x3b7   : > { %2180 = vmatmul.msk.f32.vlgmr.msra.gmra.mxu0 %vm349_vm5, %v683_v13  ;;  %2185 = vmatmul.msk.f32.vlgmr.msrb.gmra.mxu2 %vm349_vm5, %v688_v14  ;;  %v690_v36 = vmax.f32 %v674_v32, 0.0  ;;  %v670_v41 = vadd.f32 %v2824_v4, %v634_v38  ;;  %v675_v42 = vadd.f32 %v2824_v4, %v639_v39  ;;  %v681_v44 = vadd.f32 %v2824_v4, %v645_v40 }
 0x3b8   : > { %2191 = vmatmul.msk.f32.vlgmr.msrb.gmra.mxu3 %vm349_vm5, %v694_v3  ;;  %v696_v37 = vmax.f32 %v680_v33, 0.0  ;;  %v671_v54 = vadd.f32 %v2824_v4, %v635_v51  ;;  %v676_v55 = vadd.f32 %v2824_v4, %v640_v52  ;;  %v682_v56 = vadd.f32 %v2824_v4, %v646_v53 }
 0x3b9   : > { %v686_v48 = vmax.f32 %v670_v41, 0.0  ;;  %v691_v49 = vmax.f32 %v675_v42, 0.0  ;;  %v697_v50 = vmax.f32 %v681_v44, 0.0  ;;  %v677_v63 = vadd.f32 %v2824_v4, %v641_v62 }
 0x3ba   : > { %v687_v58 = vmax.f32 %v671_v54, 0.0  ;;  %v692_v59 = vmax.f32 %v676_v55, 0.0  ;;  %v698_v60 = vmax.f32 %v682_v56, 0.0 }
 0x3bb   : > { %v693_v0 = vmax.f32 %v677_v63, 0.0 }
 0x3bf   : > { %2181 = vmatmul.msk.f32.gmra.mxu0 %vm349_vm5, %v684_v25  ;;  %2186 = vmatmul.msk.f32.gmra.mxu2 %vm349_vm5, %v689_v26 }
 0x3c0   : > { %2192 = vmatmul.msk.f32.gmra.mxu3 %vm349_vm5, %v695_v27 }
 0x3c7   : > { %2182 = vmatmul.msk.f32.gmra.mxu0 %vm349_vm5, %v685_v35  ;;  %2187 = vmatmul.msk.f32.gmra.mxu2 %vm349_vm5, %v690_v36 }
 0x3c8   : > { %2193 = vmatmul.msk.f32.gmra.mxu3 %vm349_vm5, %v696_v37 }
 0x3cf   : > { %2183 = vmatmul.msk.f32.gmra.mxu0 %vm349_vm5, %v686_v48  ;;  %2188 = vmatmul.msk.f32.gmra.mxu2 %vm349_vm5, %v691_v49 }
 0x3d0   : > { %2194 = vmatmul.msk.f32.gmra.mxu3 %vm349_vm5, %v697_v50 }
 0x3d7   : > { %2184 = vmatmul.msk.f32.gmra.mxu0 %vm349_vm5, %v687_v58  ;;  %2189 = vmatmul.msk.f32.gmra.mxu2 %vm349_vm5, %v692_v59 }
 0x3d8   : > { %2195 = vmatmul.msk.f32.gmra.mxu3 %vm349_vm5, %v698_v60 }
 0x3df   : > { %2190 = vmatmul.msk.f32.gmra.mxu2 %vm349_vm5, %v693_v0 }
 0x434   : > { %v2871_v1 = vpop.f32.mrf.mxu0 }
 0x435   : > { %v845_v61 = vsel %vm844_vm13, %v2871_v1, -inf }
 0x436   : > { %v846_v2 = vrot.slane %v845_v61, 4 }
 0x438   : > { %v847_v5 = vmax.f32 %v845_v61, %v846_v2 }
 0x43a   : > { %v848_v6 = vrot.slane %v847_v5, 2  ;;  %v2875_v8 = vpop.f32.mrf.mxu2 }
 0x43b   : > { %3635 = vst [vmem:[#allocation13_spill] sm:$0xff] %v2875_v8  ;;  %v880_v9 = vsel %vm844_vm13, %v2875_v8, -inf  ;;  %v2879_v10 = vpop.f32.mrf.mxu3 }
 0x43c   : > { %3636 = vst [vmem:[#allocation14_spill] sm:$0xff] %v2879_v10  ;;  %v849_v4 = vmax.f32 %v847_v5, %v848_v6  ;;  %v881_v11 = vrot.slane %v880_v9, 4  ;;  %v922_v13 = vsel %vm844_vm13, %v2879_v10, -inf  ;;  %v2883_v14 = vpop.f32.mrf.mxu0 }
 0x43d   : > { %3637 = vst [vmem:[#allocation15_spill] sm:$0xff] %v2883_v14  ;;  %v923_v3 = vrot.slane %v922_v13, 4  ;;  %v852_v15 = vsel %vm844_vm13, %v2883_v14, -inf }
 0x43e   : > { %v850_v17 = vrot.slane %v849_v4, 1  ;;  %v882_v18 = vmax.f32 %v880_v9, %v881_v11  ;;  %v853_v19 = vrot.slane %v852_v15, 4 }
 0x43f   : > { %v924_v20 = vmax.f32 %v922_v13, %v923_v3 }
 0x440   : > { %v851_v21 = vmax.f32 %v849_v4, %v850_v17  ;;  %v883_v22 = vrot.slane %v882_v18, 2  ;;  %v854_v23 = vmax.f32 %v852_v15, %v853_v19 }
 0x441   : > { %v925_v24 = vrot.slane %v924_v20, 2 }
 0x442   : > { %v957_v25 = vsub.f32 %v2871_v1, %v851_v21  ;;  %v884_v26 = vmax.f32 %v882_v18, %v883_v22  ;;  %v855_v27 = vrot.slane %v854_v23, 2  ;;  %v2888_v28 = vpop.f32.mrf.mxu2 }
 0x443   : > { %3638 = vst [vmem:[#allocation16_spill] sm:$0xff] %v2888_v28  ;;  %v926_v29 = vmax.f32 %v924_v20, %v925_v24  ;;  %v887_v30 = vsel %vm844_vm13, %v2888_v28, -inf  ;;  %v2892_v31 = vpop.f32.mrf.mxu3 }
 0x444   : > { %3639 = vst [vmem:[#allocation17_spill] sm:$0xff] %v2892_v31  ;;  %v973_v32 = vmul.f32 1.442695, %v957_v25  ;;  %v885_v33 = vrot.slane %v884_v26, 1  ;;  %v856_v7 = vmax.f32 %v854_v23, %v855_v27  ;;  %v888_v34 = vrot.slane %v887_v30, 4  ;;  %v2894_v35 = vpop.f32.mrf.mxu0 }
 0x445   : > { %3640 = vst [vmem:[#allocation18_spill] sm:$0xff] %v2894_v35  ;;  %v927_v36 = vrot.slane %v926_v29, 1  ;;  %v929_v37 = vsel %vm844_vm13, %v2892_v31, -inf  ;;  %v859_v38 = vsel %vm844_vm13, %v2894_v35, -inf }
 0x446   : > { %2337 = vpow2.f32 %v973_v32  ;;  %v886_v39 = vmax.f32 %v884_v26, %v885_v33  ;;  %v857_v40 = vrot.slane %v856_v7, 1  ;;  %v889_v41 = vmax.f32 %v887_v30, %v888_v34 }
 0x447   : > { %v928_v42 = vmax.f32 %v926_v29, %v927_v36  ;;  %v930_v44 = vrot.slane %v929_v37, 4  ;;  %v860_v45 = vrot.slane %v859_v38, 4 }
 0x448   : > { %v962_v46 = vsub.f32 %v2875_v8, %v886_v39  ;;  %v858_v47 = vmax.f32 %v856_v7, %v857_v40  ;;  %v890_v48 = vrot.slane %v889_v41, 2 }
 0x449   : > { %v968_v49 = vsub.f32 %v2879_v10, %v928_v42  ;;  %v931_v50 = vmax.f32 %v929_v37, %v930_v44  ;;  %v861_v51 = vmax.f32 %v859_v38, %v860_v45 }
 0x44a   : > { %v983_v52 = vmul.f32 1.442695, %v962_v46  ;;  %v958_v53 = vsub.f32 %v2883_v14, %v858_v47  ;;  %v891_v54 = vmax.f32 %v889_v41, %v890_v48  ;;  %v2903_v55 = vpop.f32.mrf.mxu2  ;;  %v2936_v48 = vsel %vm1357_vm14, %v2883_v14, -inf }
 0x44b   : > { %3641 = vst [vmem:[#allocation19_spill] sm:$0xff] %v2903_v55  ;;  %v995_v56 = vmul.f32 1.442695, %v968_v49  ;;  %v932_v57 = vrot.slane %v931_v50, 2  ;;  %v862_v58 = vrot.slane %v861_v51, 2  ;;  %v894_v59 = vsel %vm844_vm13, %v2903_v55, -inf  ;;  %v2909_v61 = vpop.f32.mrf.mxu3 }
 0x44c   : > { %v2907_v60 = vpop.eup %2337  ;;  %2339 = vpow2.f32 %v983_v52  ;;  %v975_v62 = vmul.f32 1.442695, %v958_v53  ;;  %v892_v63 = vrot.slane %v891_v54, 1  ;;  %v895_v0 = vrot.slane %v894_v59, 4  ;;  %3642 = vst [vmem:[#allocation20_spill] sm:$0xff] %v2909_v61  ;;  %v2913_v13 = vpop.f32.mrf.mxu0 }
 0x44d   : > { %v1005_v2 = vsel %vm844_vm13, %v2907_v60, 0.0  ;;  %2341 = vpow2.f32 %v995_v56  ;;  %v933_v5 = vmax.f32 %v931_v50, %v932_v57  ;;  %v863_v6 = vmax.f32 %v861_v51, %v862_v58  ;;  %3643 = vst [vmem:[#allocation21_spill] sm:$0xff] %v2913_v13 }
 0x44e   : > { %v1006_v9 = vrot.slane %v1005_v2, 4  ;;  %2343 = vpow2.f32 %v975_v62  ;;  %v893_v4 = vmax.f32 %v891_v54, %v892_v63  ;;  %v896_v11 = vmax.f32 %v894_v59, %v895_v0 }
 0x44f   : > { %v934_v3 = vrot.slane %v933_v5, 1  ;;  %v864_v15 = vrot.slane %v863_v6, 1  ;;  %v936_v17 = vsel %vm844_vm13, %v2909_v61, -inf  ;;  %v866_v24 = vsel %vm844_vm13, %v2913_v13, -inf }
 0x450   : > { %v1007_v18 = vadd.f32 %v1006_v9, %v1005_v2  ;;  %v963_v19 = vsub.f32 %v2888_v28, %v893_v4  ;;  %v897_v20 = vrot.slane %v896_v11, 2  ;;  %v937_v21 = vrot.slane %v936_v17, 4 }
 0x451   : > { %v935_v22 = vmax.f32 %v933_v5, %v934_v3  ;;  %v865_v23 = vmax.f32 %v863_v6, %v864_v15  ;;  %v867_v36 = vrot.slane %v866_v24, 4  ;;  %v2942_v2 = vsel %vm1357_vm14, %v2875_v8, -inf }
 0x452   : > { %v2920_v25 = vpop.eup %2339  ;;  %v1008_v26 = vrot.slane %v1007_v18, 2  ;;  %v985_v27 = vmul.f32 1.442695, %v963_v19  ;;  %v898_v29 = vmax.f32 %v896_v11, %v897_v20  ;;  %v938_v30 = vmax.f32 %v936_v17, %v937_v21 }
 0x453   : > { %v2922_v32 = vpop.eup %2341  ;;  %v1040_v33 = vsel %vm844_vm13, %v2920_v25, 0.0  ;;  %v969_v7 = vsub.f32 %v2892_v31, %v935_v22  ;;  %v959_v34 = vsub.f32 %v2894_v35, %v865_v23  ;;  %v868_v52 = vmax.f32 %v866_v24, %v867_v36 }
 0x454   : > { %v2928_v37 = vpop.eup %2343  ;;  %v1009_v38 = vadd.f32 %v1008_v26, %v1007_v18  ;;  %v1041_v39 = vrot.slane %v1040_v33, 4  ;;  %v1082_v40 = vsel %vm844_vm13, %v2922_v32, 0.0  ;;  %2345 = vpow2.f32 %v985_v27 }
 0x455   : > { %v1083_v41 = vrot.slane %v1082_v40, 4  ;;  %v1012_v42 = vsel %vm844_vm13, %v2928_v37, 0.0  ;;  %v997_v44 = vmul.f32 1.442695, %v969_v7  ;;  %v977_v45 = vmul.f32 1.442695, %v959_v34 }
 0x456   : > { %v1042_v46 = vadd.f32 %v1041_v39, %v1040_v33  ;;  %v1013_v47 = vrot.slane %v1012_v42, 4  ;;  %v899_v49 = vrot.slane %v898_v29, 1  ;;  %v939_v51 = vrot.slane %v938_v30, 2 }
 0x457   : > { %v1084_v50 = vadd.f32 %v1083_v41, %v1082_v40  ;;  %2347 = vpow2.f32 %v997_v44  ;;  %v1010_v53 = vrot.slane %v1009_v38, 1  ;;  %v869_v62 = vrot.slane %v868_v52, 2 }
 0x458   : > { %v1043_v54 = vrot.slane %v1042_v46, 2  ;;  %v1014_v56 = vadd.f32 %v1013_v47, %v1012_v42  ;;  %2349 = vpow2.f32 %v977_v45  ;;  %v900_v58 = vmax.f32 %v898_v29, %v899_v49  ;;  %v2986_v49 = vpop.f32.mrf.mxu3 }
 0x459   : > { %v1085_v57 = vrot.slane %v1084_v50, 2  ;;  %v940_v59 = vmax.f32 %v938_v30, %v939_v51  ;;  %v2946_v6 = vsel %vm1357_vm14, %v2871_v1, -inf  ;;  %v2950_v9 = vsel %vm1357_vm14, %v2879_v10, -inf }
 0x45a   : > { %v2938_v63 = vpop.eup %2345  ;;  %v1044_v0 = vadd.f32 %v1043_v54, %v1042_v46  ;;  %v1015_v5 = vrot.slane %v1014_v56, 2  ;;  %v964_v11 = vsub.f32 %v2903_v55, %v900_v58  ;;  %v2959_v19 = vsel %vm1357_vm14, %v2888_v28, -inf }
 0x45b   : > { %v1047_v4 = vsel %vm844_vm13, %v2938_v63, 0.0  ;;  %v941_v3 = vrot.slane %v940_v59, 1  ;;  %v1086_v15 = vadd.f32 %v1085_v57, %v1084_v50  ;;  %v2963_v21 = vadd.f32 %v1010_v53, %v1009_v38  ;;  %v2975_v38 = vpop.f32.mrf.mxu2 }
 0x45c   : > { %v1048_v18 = vrot.slane %v1047_v4, 4  ;;  %v987_v22 = vmul.f32 1.442695, %v964_v11  ;;  %v870_v24 = vmax.f32 %v868_v52, %v869_v62  ;;  %v1045_v27 = vrot.slane %v1044_v0, 1  ;;  %3644 = vst [vmem:[#allocation22_spill] sm:$0xff] %v2975_v38 }
 0x45d   : > { %v2961_v20 = vpop.eup %2347  ;;  %v942_v23 = vmax.f32 %v940_v59, %v941_v3  ;;  %v1016_v29 = vadd.f32 %v1015_v5, %v1014_v56  ;;  %v2971_v34 = vsel %vm1357_vm14, %v2892_v31, -inf  ;;  %v1087_v39 = vrot.slane %v1086_v15, 1 }
 0x45e   : > { %v2965_v26 = vpop.eup %2349  ;;  %v1049_v30 = vadd.f32 %v1048_v18, %v1047_v4  ;;  %v1089_v33 = vsel %vm844_vm13, %v2961_v20, 0.0  ;;  %2351 = vpow2.f32 %v987_v22  ;;  %v2979_v42 = vsel %vm1357_vm14, %v2894_v35, -inf }
 0x45f   : > { %v1090_v7 = vrot.slane %v1089_v33, 4  ;;  %v1019_v36 = vsel %vm844_vm13, %v2965_v26, 0.0  ;;  %v2983_v45 = vsel %vm1357_vm14, %v2903_v55, -inf  ;;  %v970_v46 = vsub.f32 %v2909_v61, %v942_v23 }
 0x460   : > { %v1050_v40 = vrot.slane %v1049_v30, 2  ;;  %v1020_v41 = vrot.slane %v1019_v36, 4  ;;  %v871_v47 = vrot.slane %v870_v24, 1  ;;  %2353 = vrcp.f32 %v2963_v21 }
 0x461   : > { %v1091_v44 = vadd.f32 %v1090_v7, %v1089_v33  ;;  %v2989_v50 = vadd.f32 %v1045_v27, %v1044_v0  ;;  %v1017_v51 = vrot.slane %v1016_v29, 1  ;;  %v901_v52 = vsel %vm844_vm13, %v2975_v38, -inf  ;;  %v3009_v33 = vpop.f32.mrf.mxu0 }
 0x462   : > { %v1051_v53 = vadd.f32 %v1050_v40, %v1049_v30  ;;  %v999_v54 = vmul.f32 1.442695, %v970_v46  ;;  %v872_v56 = vmax.f32 %v870_v24, %v871_v47  ;;  %v902_v57 = vrot.slane %v901_v52, 4 }
 0x463   : > { %v2993_v58 = vadd.f32 %v1087_v39, %v1086_v15  ;;  %v1021_v59 = vadd.f32 %v1020_v41, %v1019_v36  ;;  %v2997_v62 = vsel %vm1357_vm14, %v2913_v13, -inf  ;;  %v943_v5 = vsel %vm844_vm13, %v2986_v49, -inf }
 0x464   : > { %v3001_v0 = vpop.eup %2351  ;;  %v1092_v4 = vrot.slane %v1091_v44, 2  ;;  %2355 = vpow2.f32 %v999_v54  ;;  %v960_v11 = vsub.f32 %v2913_v13, %v872_v56  ;;  %v903_v3 = vmax.f32 %v901_v52, %v902_v57 }
 0x465   : > { %2357 = vrcp.f32 %v2989_v50  ;;  %v3005_v18 = vadd.f32 %v1017_v51, %v1016_v29  ;;  %v1054_v15 = vsel %vm844_vm13, %v3001_v0, 0.0  ;;  %v944_v22 = vrot.slane %v943_v5, 4 }
 0x466   : > { %v1052_v23 = vrot.slane %v1051_v53, 1  ;;  %v1055_v24 = vrot.slane %v1054_v15, 4  ;;  %v979_v27 = vmul.f32 1.442695, %v960_v11  ;;  %v904_v30 = vrot.slane %v903_v3, 2  ;;  %v3011_v7 = vpop.eup %2353 }
 0x467   : > { %2359 = vrcp.f32 %v2993_v58  ;;  %v1022_v36 = vrot.slane %v1021_v59, 2  ;;  %v3016_v39 = vsel %vm1357_vm14, %v2909_v61, -inf  ;;  %v945_v29 = vmax.f32 %v943_v5, %v944_v22 }
 0x468   : > { %v1093_v40 = vadd.f32 %v1092_v4, %v1091_v44  ;;  %v1056_v41 = vadd.f32 %v1055_v24, %v1054_v15  ;;  %2361 = vpow2.f32 %v979_v27  ;;  %v905_v46 = vmax.f32 %v903_v3, %v904_v30  ;;  %v3027_v44 = vpop.f32.mrf.mxu2 }
 0x469   : > { %2363 = vrcp.f32 %v3005_v18  ;;  %v946_v51 = vrot.slane %v945_v29, 2  ;;  %v873_v52 = vsel %vm844_vm13, %v3009_v33, -inf  ;;  %v3025_v56 = vadd.f32 %v1052_v23, %v1051_v53 }
 0x46a   : > { %v3023_v54 = vpop.eup %2355  ;;  %v1057_v57 = vrot.slane %v1056_v41, 2  ;;  %v906_v11 = vrot.slane %v905_v46, 1  ;;  %v874_v5 = vrot.slane %v873_v52, 4  ;;  %v1023_v3 = vadd.f32 %v1022_v36, %v1021_v59 }
 0x46b   : > { %v3029_v4 = vpop.eup %2357  ;;  %v1096_v15 = vsel %vm844_vm13, %v3023_v54, 0.0  ;;  %v1370_v22 = vsel %vm1357_vm14, %v2975_v38, -inf  ;;  %v947_v24 = vmax.f32 %v945_v29, %v946_v51  ;;  %v1094_v27 = vrot.slane %v1093_v40, 1 }
 0x46c   : > { %v1097_v30 = vrot.slane %v1096_v15, 4  ;;  %v907_v47 = vmax.f32 %v905_v46, %v906_v11  ;;  %v875_v53 = vmax.f32 %v873_v52, %v874_v5  ;;  %v1058_v17 = vadd.f32 %v1057_v57, %v1056_v41  ;;  %v3049_v5 = vpop.f32.mrf.mxu3 }
 0x46d   : > { %v3035_v23 = vpop.eup %2359  ;;  %v948_v16 = vrot.slane %v947_v24, 1  ;;  %v1362_v12 = vsel %vm1357_vm14, %v3009_v33, -inf  ;;  %v908_v59 = vsel %vm844_vm13, %v3027_v44, -inf  ;;  %2365 = vrcp.f32 %v3025_v56  ;;  %3645 = vst [vmem:[#allocation23_spill] sm:$0xff] %v3049_v5 }
 0x46e   : > { %v3041_v36 = vpop.eup %2361  ;;  %v1098_v43 = vadd.f32 %v1097_v30, %v1096_v15  ;;  %v965_v29 = vsub.f32 %v2975_v38, %v907_v47  ;;  %v876_v51 = vrot.slane %v875_v53, 2  ;;  %v1024_v52 = vrot.slane %v1023_v3, 1 }
 0x46f   : > { %v3045_v46 = vpop.eup %2363  ;;  %v1026_v41 = vsel %vm844_vm13, %v3041_v36, 0.0  ;;  %v949_v57 = vmax.f32 %v947_v24, %v948_v16  ;;  %v909_v11 = vrot.slane %v908_v59, 4  ;;  %v1363_v55 = vmax.f32 %v2946_v6, %v1362_v12 }
 0x470   : > { %v1099_v61 = vrot.slane %v1098_v43, 2  ;;  %v1027_v31 = vrot.slane %v1026_v41, 4  ;;  %v989_v10 = vmul.f32 1.442695, %v965_v29  ;;  %v1059_v28 = vrot.slane %v1058_v17, 1 }
 0x471   : > { %v971_v15 = vsub.f32 %v2986_v49, %v949_v57  ;;  %v877_v47 = vmax.f32 %v875_v53, %v876_v51  ;;  %v910_v30 = vmax.f32 %v908_v59, %v909_v11  ;;  %v3053_v38 = vadd.f32 %v1094_v27, %v1093_v40  ;;  %v3063_v40 = vpop.f32.mrf.mxu2 }
 0x472   : > { %v1028_v8 = vadd.f32 %v1027_v31, %v1026_v41  ;;  %v1372_v13 = vsel %vm1357_vm14, %v3027_v44, -inf  ;;  %v950_v16 = vsel %vm844_vm13, %v3049_v5, -inf  ;;  %2367 = vpow2.f32 %v989_v10 }
 0x473   : > { %v1001_v24 = vmul.f32 1.442695, %v971_v15  ;;  %v878_v35 = vrot.slane %v877_v47, 1  ;;  %v911_v29 = vrot.slane %v910_v30, 2  ;;  %v3059_v14 = vpop.eup %2365  ;;  %v3061_v12 = vadd.f32 %v1024_v52, %v1023_v3 }
 0x474   : > { %v1100_v6 = vadd.f32 %v1099_v61, %v1098_v43  ;;  %v1371_v53 = vmax.f32 %v1363_v55, %v1370_v22  ;;  %v951_v59 = vrot.slane %v950_v16, 4  ;;  %v3065_v31 = vadd.f32 %v1059_v28, %v1058_v17 }
 0x475   : > { %2369 = vpow2.f32 %v1001_v24  ;;  %v879_v27 = vmax.f32 %v877_v47, %v878_v35  ;;  %v912_v51 = vmax.f32 %v910_v30, %v911_v29  ;;  %v1029_v41 = vrot.slane %v1028_v8, 2 }
 0x476   : > { %v3069_v10 = vsel %vm1357_vm14, %v2986_v49, -inf  ;;  %v3646_v57 = vmax.f32 %v2936_v48, %v2942_v2  ;;  %v952_v52 = vmax.f32 %v950_v16, %v951_v59  ;;  %2371 = vrcp.f32 %v3053_v38 }
 0x477   : > { %v961_v43 = vsub.f32 %v3009_v33, %v879_v27  ;;  %v913_v55 = vrot.slane %v912_v51, 1  ;;  %v915_v28 = vsel %vm844_vm13, %v3063_v40, -inf  ;;  %2373 = vrcp.f32 %v3061_v12 }
 0x478   : > { %v1373_v3 = vmax.f32 %v3646_v57, %v1372_v13  ;;  %v1101_v35 = vrot.slane %v1100_v6, 1  ;;  %v1379_v61 = vmax.f32 %v1371_v53, %v2971_v34  ;;  %v953_v17 = vrot.slane %v952_v52, 2  ;;  %v3080_v22 = vpop.eup %2367 }
 0x479   : > { %2375 = vrcp.f32 %v3065_v31  ;;  %v981_v13 = vmul.f32 1.442695, %v961_v43  ;;  %v914_v48 = vmax.f32 %v912_v51, %v913_v55  ;;  %v916_v2 = vrot.slane %v915_v28, 4 }
 0x47a   : > { %v1030_v11 = vadd.f32 %v1029_v41, %v1028_v8  ;;  %v1061_v15 = vsel %vm844_vm13, %v3080_v22, 0.0  ;;  %v1381_v47 = vmax.f32 %v1373_v3, %v3016_v39  ;;  %v954_v30 = vmax.f32 %v952_v52, %v953_v17 }
 0x47b   : > { %v3086_v16 = vpop.eup %2369  ;;  %v1062_v24 = vrot.slane %v1061_v15, 4  ;;  %2377 = vpow2.f32 %v981_v13  ;;  %v966_v34 = vsub.f32 %v3027_v44, %v914_v48  ;;  %v917_v29 = vmax.f32 %v915_v28, %v916_v2 }
 0x47c   : > { %v3089_v53 = vadd.f32 %v1101_v35, %v1100_v6  ;;  %v1103_v59 = vsel %vm844_vm13, %v3086_v16, 0.0  ;;  %v955_v27 = vrot.slane %v954_v30, 1  ;;  %v3647_v8 = vmax.f32 %v2997_v62, %v2983_v45  ;;  %v3099_v39 = vpop.eup %2371 }
 0x47d   : > { %v1063_v41 = vadd.f32 %v1062_v24, %v1061_v15  ;;  %v1104_v57 = vrot.slane %v1103_v59, 4  ;;  %v991_v3 = vmul.f32 1.442695, %v966_v34  ;;  %v918_v52 = vrot.slane %v917_v29, 2  ;;  %v3101_v43 = vpop.eup %2373 }
 0x47e   : > { %v3097_v51 = vmax.f32 %v3647_v8, %v2950_v9  ;;  %v1031_v6 = vrot.slane %v1030_v11, 1  ;;  %v956_v55 = vmax.f32 %v954_v30, %v955_v27  ;;  %v1118_v28 = vmul.f32 %v3011_v7, %v2963_v21 }
 0x47f   : > { %v3105_v35 = vpop.eup %2375  ;;  %v1064_v17 = vrot.slane %v1063_v41, 2  ;;  %v1105_v13 = vadd.f32 %v1104_v57, %v1103_v59  ;;  %2379 = vpow2.f32 %v991_v3  ;;  %v919_v9 = vmax.f32 %v917_v29, %v918_v52 }
 0x480   : > { %v2580_v45 = vmov 0   ;;  %v3107_v62 = vmax.f32 %v1379_v61, %v1381_v47  ;;  %v972_v48 = vsub.f32 %v3049_v5, %v956_v55  ;;  %v3112_v2 = vsel %vm1357_vm14, %v3049_v5, -inf }
 0x481   : > { %2320 = vset.pattern.permute.xlu1 %v2580_v45  ;;  %2321 = vset.pattern.permute.xlu2 %v2580_v45  ;;  %v1119_v15 = vsub.f32 1.0, %v1118_v28  ;;  %v3114_v30 = vpop.eup %2377  ;;  %v1065_v24 = vadd.f32 %v1064_v17, %v1063_v41  ;;  %v1106_v34 = vrot.slane %v1105_v13, 2  ;;  %v920_v59 = vrot.slane %v919_v9, 1 }
 0x482   : > { %2322 = vset.pattern.permute.xlu0 %v2580_v45  ;;  %v1374_v29 = vsel %vm1357_vm14, %v3063_v40, -inf  ;;  %v1033_v61 = vsel %vm844_vm13, %v3114_v30, 0.0  ;;  %v1003_v47 = vmul.f32 1.442695, %v972_v48  ;;  %v1367_v27 = vmax.f32 %v2979_v42, %v2959_v19 }
 0x483   : > { %v1120_v8 = vmul.f32 %v3011_v7, %v1119_v15  ;;  %v3123_v57 = vadd.f32 %v1031_v6, %v1030_v11  ;;  %v1107_v3 = vadd.f32 %v1106_v34, %v1105_v13  ;;  %v1034_v52 = vrot.slane %v1033_v61, 4 }
 0x484   : > { %v921_v55 = vmax.f32 %v919_v9, %v920_v59  ;;  %v1066_v41 = vrot.slane %v1065_v24, 1  ;;  %2381 = vpow2.f32 %v1003_v47  ;;  %v1375_v28 = vmax.f32 %v1367_v27, %v1374_v29 }
 0x485   : > { %vm1123_vm15 = vweird.f32 %v3011_v7  ;;  %v3126_v17 = vpop.eup %2379  ;;  %v1035_v45 = vadd.f32 %v1034_v52, %v1033_v61  ;;  %v1121_v5 = vadd.f32 %v3011_v7, %v1120_v8  ;;  %v1126_v19 = vand.u32 2147483647, %v2963_v21 }
 0x486   : > { %v967_v48 = vsub.f32 %v3063_v40, %v921_v55  ;;  %2383 = vrcp.f32 %v3089_v53  ;;  %v1108_v42 = vrot.slane %v1107_v3, 1  ;;  %v1068_v11 = vsel %vm844_vm13, %v3126_v17, 0.0 }
 0x487   : > { %v1385_v6 = vmax.f32 %v3097_v51, %v3112_v2  ;;  %2385 = vrcp.f32 %v3123_v57  ;;  %v1036_v13 = vrot.slane %v1035_v45, 2  ;;  %v1069_v9 = vrot.slane %v1068_v11, 4 }
 0x488   : > { %vm1122_vm1 = vweird.f32 %v2963_v21  ;;  %v993_v15 = vmul.f32 1.442695, %v967_v48  ;;  %v1383_v34 = vmax.f32 %v1375_v28, %v3069_v10  ;;  %v1128_v29 = vand.u32 2147483648, %v2963_v21 }
 0x489   : > { %vm3141_vm2 = vmor %vm1122_vm1, %vm1123_vm15  ;;  %v1193_v51 = vmul.f32 %v3029_v4, %v2989_v50  ;;  %v3148_v2 = vadd.f32 %v1066_v41, %v1065_v24  ;;  %v1070_v61 = vadd.f32 %v1069_v9, %v1068_v11  ;;  %vm1127_vm3 = vcmp.eq.f32.partialorder %v1126_v19, 8.507059e+37 }
 0x48a   : > { %v1125_v47 = vsel %vm3141_vm2, %v3011_v7, %v1121_v5  ;;  %v3153_v10 = vpop.eup %2381  ;;  %v3155_v27 = vadd.f32 %v1108_v42, %v1107_v3  ;;  %2387 = vpow2.f32 %v993_v15  ;;  %v1129_v8 = vor.u32 1.1754944e-38, %v1128_v29 }
 0x48b   : > { %v1194_v52 = vsub.f32 1.0, %v1193_v51  ;;  %v1037_v55 = vadd.f32 %v1036_v13, %v1035_v45  ;;  %v1071_v21 = vrot.slane %v1070_v61, 2  ;;  %v1110_v28 = vsel %vm844_vm13, %v3153_v10, 0.0 }
 0x48c   : > { %vm1198_vm4 = vweird.f32 %v3029_v4  ;;  %v3160_v24 = vpop.eup %2383  ;;  %v1111_v41 = vrot.slane %v1110_v28, 4  ;;  %v1130_v48 = vsel %vm1127_vm3, %v1129_v8, %v1125_v47  ;;  %v1203_v5 = vand.u32 2147483648, %v2989_v50 }
 0x48d   : > { %v1195_v7 = vmul.f32 %v3029_v4, %v1194_v52  ;;  %v3164_v3 = vpop.eup %2385  ;;  %2389 = vrcp.f32 %v3148_v2  ;;  %v1072_v19 = vadd.f32 %v1071_v21, %v1070_v61  ;;  %v1131_v45 = vmul.f32 %v2907_v60, %v1130_v48 }
 0x48e   : > { %v1201_v42 = vand.u32 2147483647, %v2989_v50  ;;  %v1112_v11 = vadd.f32 %v1111_v41, %v1110_v28  ;;  %vm1197_vm5 = vweird.f32 %v2989_v50  ;;  %v1133_v9 = vmul.f32 %v3045_v46, %v3005_v18 }
 0x48f   : > { %v1196_v13 = vadd.f32 %v3029_v4, %v1195_v7  ;;  %2391 = vrcp.f32 %v3155_v27  ;;  %v1038_v15 = vrot.slane %v1037_v55, 1  ;;  %v3174_v59 = vmax.f32 %v1383_v34, %v1385_v6  ;;  %1500 = vperm.xlu1 %2320, %v1131_v45   ;;  %vm1199_vm6 = vmor %vm1197_vm5, %vm1198_vm4 }
 0x490   : > { %v1204_v60 = vor.u32 1.1754944e-38, %v1203_v5  ;;  %v3178_v29 = vpop.eup %2387  ;;  %v1073_v51 = vrot.slane %v1072_v19, 1  ;;  %v1113_v61 = vrot.slane %v1112_v11, 2  ;;  %v1134_v50 = vsub.f32 1.0, %v1133_v9 }
 0x491   : > { %v1200_v47 = vsel %vm1199_vm6, %v3029_v4, %v1196_v13  ;;  %v1075_v8 = vsel %vm844_vm13, %v3178_v29, 0.0  ;;  %vm1202_vm7 = vcmp.eq.f32.partialorder %v1201_v42, 8.507059e+37  ;;  %vm1138_vm8 = vweird.f32 %v3045_v46 }
 0x492   : > { %v1141_v6 = vand.u32 2147483647, %v3005_v18  ;;  %v1114_v34 = vadd.f32 %v1113_v61, %v1112_v11  ;;  %v1076_v52 = vrot.slane %v1075_v8, 4  ;;  %v1205_v21 = vsel %vm1202_vm7, %v1204_v60, %v1200_v47 }
 0x493   : > { %v1135_v28 = vmul.f32 %v3045_v46, %v1134_v50  ;;  %v3186_v41 = vpop.eup %2389  ;;  %v3188_v48 = vadd.f32 %v1038_v15, %v1037_v55  ;;  %vm1137_vm9 = vweird.f32 %v3005_v18  ;;  %v1143_v4 = vand.u32 2147483648, %v3005_v18 }
 0x494   : > { %v1283_v7 = vmul.f32 %v3035_v23, %v2993_v58  ;;  %v3194_v5 = vadd.f32 %v1073_v51, %v1072_v19  ;;  %v1115_v45 = vrot.slane %v1114_v34, 1  ;;  %v1077_v42 = vadd.f32 %v1076_v52, %v1075_v8  ;;  %vm1139_vm10 = vmor %vm1137_vm9, %vm1138_vm8 }
 0x495   : > { %v1136_v11 = vadd.f32 %v3045_v46, %v1135_v28  ;;  %v3197_v13 = vpop.eup %2391  ;;  %v1206_v9 = vmul.f32 %v2920_v25, %v1205_v21  ;;  %vm1142_vm11 = vcmp.eq.f32.partialorder %v1141_v6, 8.507059e+37  ;;  %v1144_v55 = vor.u32 1.1754944e-38, %v1143_v4 }
 0x496   : > { %v1284_v15 = vsub.f32 1.0, %v1283_v7  ;;  %v1078_v18 = vrot.slane %v1077_v42, 2  ;;  %v1291_v19 = vand.u32 2147483647, %v2993_v58  ;;  %v1293_v51 = vand.u32 2147483648, %v2993_v58 }
 0x497   : > { %v1140_v60 = vsel %vm1139_vm10, %v3045_v46, %v1136_v11  ;;  %1525 = vperm.xlu1 %2320, %v1206_v9   ;;  %vm1288_vm12 = vweird.f32 %v3035_v23  ;;  %v1208_v25 = vmul.f32 %v3059_v14, %v3025_v56  ;;  %2393 = vrcp.f32 %v3188_v48 }
 0x498   : > { %v1145_v61 = vsel %vm1142_vm11, %v1144_v55, %v1140_v60  ;;  %v1285_v47 = vmul.f32 %v3035_v23, %v1284_v15  ;;  %v3210_v50 = vadd.f32 %v1115_v45, %v1114_v34  ;;  %v1079_v8 = vadd.f32 %v1078_v18, %v1077_v42 }
 0x499   : > { %v1146_v46 = vmul.f32 %v2928_v37, %v1145_v61  ;;  %2395 = vrcp.f32 %v3194_v5  ;;  %vm1287_vm13 = vweird.f32 %v2993_v58  ;;  %v1209_v52 = vsub.f32 1.0, %v1208_v25 }
 0x49a   : > { %v1286_v6 = vadd.f32 %v3035_v23, %v1285_v47  ;;  %vm1289_vm15 = vmor %vm1287_vm13, %vm1288_vm12  ;;  %vm1292_vm1 = vcmp.eq.f32.partialorder %v1291_v19, 8.507059e+37  ;;  %v1294_v21 = vor.u32 1.1754944e-38, %v1293_v51  ;;  %v1218_v28 = vand.u32 2147483648, %v3025_v56 }
 0x49b   : > { %1505 = vperm.xlu2 %2321, %v1146_v46   ;;  %v1148_v34 = vmul.f32 %v3101_v43, %v3061_v12  ;;  %v1210_v37 = vmul.f32 %v3059_v14, %v1209_v52  ;;  %vm1213_vm2 = vweird.f32 %v3059_v14  ;;  %v1216_v7 = vand.u32 2147483647, %v3025_v56 }
 0x49c   : > { %v1290_v4 = vsel %vm1289_vm15, %v3035_v23, %v1286_v6  ;;  %2397 = vrcp.f32 %v3210_v50  ;;  %v1080_v58 = vrot.slane %v1079_v8, 1  ;;  %vm1212_vm3 = vweird.f32 %v3025_v56 }
 0x49d   : > { %v1295_v45 = vsel %vm1292_vm1, %v1294_v21, %v1290_v4  ;;  %v1211_v11 = vadd.f32 %v3059_v14, %v1210_v37  ;;  %v1149_v9 = vsub.f32 1.0, %v1148_v34  ;;  %vm1152_vm4 = vweird.f32 %v3061_v12  ;;  %v3228_v23 = vpop.eup %2393  ;;  %vm1214_vm5 = vmor %vm1212_vm3, %vm1213_vm2 }
 0x49e   : > { %v1296_v42 = vmul.f32 %v2922_v32, %v1295_v45  ;;  %v1219_v55 = vor.u32 1.1754944e-38, %v1218_v28  ;;  %vm1153_vm6 = vweird.f32 %v3101_v43  ;;  %v1158_v15 = vand.u32 2147483648, %v3061_v12 }
 0x49f   : > { %v1298_v18 = vmul.f32 %v3099_v39, %v3053_v38  ;;  %v3234_v60 = vpop.eup %2395  ;;  %v1215_v32 = vsel %vm1214_vm5, %v3059_v14, %v1211_v11  ;;  %vm1217_vm7 = vcmp.eq.f32.partialorder %v1216_v7, 8.507059e+37  ;;  %v1150_v56 = vmul.f32 %v3101_v43, %v1149_v9  ;;  %vm1154_vm9 = vmor %vm1152_vm4, %vm1153_vm6 }
 0x4a0   : > { %1555 = vperm.xlu1 %2320, %v1296_v42   ;;  %v1156_v19 = vand.u32 2147483647, %v3061_v12  ;;  %v3239_v51 = vadd.f32 %v1080_v58, %v1079_v8  ;;  %v1220_v61 = vsel %vm1217_vm7, %v1219_v55, %v1215_v32  ;;  %vm1302_vm8 = vweird.f32 %v3053_v38 }
 0x4a1   : > { %v1299_v47 = vsub.f32 1.0, %v1298_v18  ;;  %v1221_v25 = vmul.f32 %v2938_v63, %v1220_v61  ;;  %v1151_v46 = vadd.f32 %v3101_v43, %v1150_v56  ;;  %v1308_v6 = vand.u32 2147483648, %v3053_v38 }
 0x4a2   : > { %v1223_v14 = vmul.f32 %v3105_v35, %v3065_v31  ;;  %v3247_v52 = vpop.eup %2397  ;;  %v1159_v8 = vor.u32 1.1754944e-38, %v1158_v15  ;;  %vm1303_vm10 = vweird.f32 %v3099_v39  ;;  %v1306_v63 = vand.u32 2147483647, %v3053_v38 }
 0x4a3   : > { %v1300_v21 = vmul.f32 %v3099_v39, %v1299_v47  ;;  %1530 = vperm.xlu2 %2321, %v1221_v25   ;;  %v1155_v28 = vsel %vm1154_vm9, %v3101_v43, %v1151_v46  ;;  %vm1157_vm11 = vcmp.eq.f32.partialorder %v1156_v19, 8.507059e+37  ;;  %vm1228_vm12 = vweird.f32 %v3105_v35  ;;  %vm1304_vm13 = vmor %vm1302_vm8, %vm1303_vm10 }
 0x4a4   : > { %v1224_v34 = vsub.f32 1.0, %v1223_v14  ;;  %v1160_v4 = vsel %vm1157_vm11, %v1159_v8, %v1155_v28  ;;  %v1233_v12 = vand.u32 2147483648, %v3065_v31  ;;  %v1163_v7 = vmul.f32 %v3164_v3, %v3123_v57 }
 0x4a5   : > { %v1301_v37 = vadd.f32 %v3099_v39, %v1300_v21  ;;  %v1161_v58 = vmul.f32 %v2965_v26, %v1160_v4  ;;  %v1309_v45 = vor.u32 1.1754944e-38, %v1308_v6  ;;  %v1231_v42 = vand.u32 2147483647, %v3065_v31 }
 0x4a6   : > { %v1225_v43 = vmul.f32 %v3105_v35, %v1224_v34  ;;  %vm1307_vm15 = vcmp.eq.f32.partialorder %v1306_v63, 8.507059e+37  ;;  %vm1227_vm1 = vweird.f32 %v3065_v31  ;;  %v1164_v9 = vsub.f32 1.0, %v1163_v7 }
 0x4a7   : > { %v1305_v11 = vsel %vm1304_vm13, %v3099_v39, %v1301_v37  ;;  %1510 = vperm.xlu0 %2322, %v1161_v58   ;;  %v1171_v26 = vand.u32 2147483647, %v3123_v57  ;;  %v1173_v38 = vand.u32 2147483648, %v3123_v57  ;;  %vm1229_vm2 = vmor %vm1227_vm1, %vm1228_vm12  ;;  %v1234_v18 = vor.u32 1.1754944e-38, %v1233_v12 }
 0x4a8   : > { %v1310_v55 = vsel %vm1307_vm15, %v1309_v45, %v1305_v11  ;;  %v1226_v15 = vadd.f32 %v3105_v35, %v1225_v43  ;;  %v1165_v32 = vmul.f32 %v3164_v3, %v1164_v9  ;;  %vm1168_vm3 = vweird.f32 %v3164_v3 }
 0x4a9   : > { %v1313_v31 = vmul.f32 %v3160_v24, %v3089_v53  ;;  %2399 = vrcp.f32 %v3239_v51  ;;  %v1311_v39 = vmul.f32 %v2961_v20, %v1310_v55  ;;  %vm1232_vm4 = vcmp.eq.f32.partialorder %v1231_v42, 8.507059e+37 }
 0x4aa   : > { %v1230_v56 = vsel %vm1229_vm2, %v3105_v35, %v1226_v15  ;;  %v1166_v61 = vadd.f32 %v3164_v3, %v1165_v32  ;;  %vm1167_vm5 = vweird.f32 %v3123_v57  ;;  %vm1172_vm7 = vcmp.eq.f32.partialorder %v1171_v26, 8.507059e+37 }
 0x4ab   : > { %v1235_v19 = vsel %vm1232_vm4, %v1234_v18, %v1230_v56  ;;  %v1314_v47 = vsub.f32 1.0, %v1313_v31  ;;  %1560 = vperm.xlu2 %2321, %v1311_v39   ;;  %vm1169_vm6 = vmor %vm1167_vm5, %vm1168_vm3  ;;  %v1174_v25 = vor.u32 1.1754944e-38, %v1173_v38  ;;  %v1323_v46 = vand.u32 2147483648, %v3089_v53 }
 0x4ac   : > { %v1238_v6 = vmul.f32 %v3186_v41, %v3148_v2  ;;  %v1170_v20 = vsel %vm1169_vm6, %v3164_v3, %v1166_v61  ;;  %vm1318_vm8 = vweird.f32 %v3160_v24  ;;  %v1321_v14 = vand.u32 2147483647, %v3089_v53 }
 0x4ad   : > { %v1315_v35 = vmul.f32 %v3160_v24, %v1314_v47  ;;  %v1236_v57 = vmul.f32 %v3001_v0, %v1235_v19  ;;  %v1175_v8 = vsel %vm1172_vm7, %v1174_v25, %v1170_v20  ;;  %vm1317_vm9 = vweird.f32 %v3089_v53 }
 0x4ae   : > { %v1239_v21 = vsub.f32 1.0, %v1238_v6  ;;  %v1176_v63 = vmul.f32 %v3041_v36, %v1175_v8  ;;  %v1248_v34 = vand.u32 2147483648, %v3148_v2  ;;  %v1178_v3 = vmul.f32 %v3228_v23, %v3188_v48  ;;  %vm1319_vm10 = vmor %vm1317_vm9, %vm1318_vm8 }
 0x4af   : > { %v1316_v28 = vadd.f32 %v3160_v24, %v1315_v35  ;;  %v3297_v4 = vpop.eup %2399  ;;  %1535 = vperm.xlu0 %2322, %v1236_v57   ;;  %v1324_v37 = vor.u32 1.1754944e-38, %v1323_v46  ;;  %vm1243_vm11 = vweird.f32 %v3186_v41  ;;  %v1246_v53 = vand.u32 2147483647, %v3148_v2 }
 0x4b0   : > { %v1240_v0 = vmul.f32 %v3186_v41, %v1239_v21  ;;  %1515 = vperm.xlu1 %2320, %v1176_v63   ;;  %vm1322_vm12 = vcmp.eq.f32.partialorder %v1321_v14, 8.507059e+37  ;;  %vm1242_vm13 = vweird.f32 %v3148_v2  ;;  %v1179_v12 = vsub.f32 1.0, %v1178_v3 }
 0x4b1   : > { %v1320_v36 = vsel %vm1319_vm10, %v3160_v24, %v1316_v28  ;;  %v1188_v45 = vand.u32 2147483648, %v3188_v48  ;;  %v1328_v43 = vmul.f32 %v3197_v13, %v3155_v27  ;;  %vm1244_vm15 = vmor %vm1242_vm13, %vm1243_vm11  ;;  %v1249_v42 = vor.u32 1.1754944e-38, %v1248_v34 }
 0x4b2   : > { %v1325_v7 = vsel %vm1322_vm12, %v1324_v37, %v1320_v36  ;;  %v1241_v58 = vadd.f32 %v3186_v41, %v1240_v0  ;;  %v1180_v11 = vmul.f32 %v3228_v23, %v1179_v12  ;;  %vm1183_vm1 = vweird.f32 %v3228_v23  ;;  %v3650_v12 = vld [vmem:[#allocation15_spill] sm:$0xff] }
 0x4b3   : > { %v1186_v24 = vand.u32 2147483647, %v3188_v48  ;;  %vm1247_vm2 = vcmp.eq.f32.partialorder %v1246_v53, 8.507059e+37  ;;  %vm1182_vm3 = vweird.f32 %v3188_v48  ;;  %v1329_v2 = vsub.f32 1.0, %v1328_v43 }
 0x4b4   : > { %v1245_v9 = vsel %vm1244_vm15, %v3186_v41, %v1241_v58  ;;  %v1326_v55 = vmul.f32 %v3023_v54, %v1325_v7  ;;  %v1181_v26 = vadd.f32 %v3228_v23, %v1180_v11  ;;  %v1338_v38 = vand.u32 2147483648, %v3155_v27  ;;  %vm1184_vm4 = vmor %vm1182_vm3, %vm1183_vm1 }
 0x4b5   : > { %v1250_v15 = vsel %vm1247_vm2, %v1249_v42, %v1245_v9  ;;  %v1189_v18 = vor.u32 1.1754944e-38, %v1188_v45  ;;  %v1330_v32 = vmul.f32 %v3197_v13, %v1329_v2  ;;  %vm1333_vm5 = vweird.f32 %v3197_v13  ;;  %v3652_v45 = vld [vmem:[#allocation21_spill] sm:$0xff] }
 0x4b6   : > { %v1253_v41 = vmul.f32 %v3234_v60, %v3194_v5  ;;  %v1251_v31 = vmul.f32 %v3080_v22, %v1250_v15  ;;  %v1185_v48 = vsel %vm1184_vm4, %v3228_v23, %v1181_v26  ;;  %vm1187_vm6 = vcmp.eq.f32.partialorder %v1186_v24, 8.507059e+37 }
 0x4b7   : > { %v1336_v54 = vand.u32 2147483647, %v3155_v27  ;;  %1565 = vperm.xlu0 %2322, %v1326_v55   ;;  %v1190_v39 = vsel %vm1187_vm6, %v1189_v18, %v1185_v48  ;;  %v1331_v56 = vadd.f32 %v3197_v13, %v1330_v32  ;;  %vm1332_vm7 = vweird.f32 %v3155_v27  ;;  %v3656_v48 = vld [vmem:[#allocation22_spill] sm:$0xff] }
 0x4b8   : > { %v1254_v19 = vsub.f32 1.0, %v1253_v41  ;;  %1540 = vperm.xlu1 %2320, %v1251_v31   ;;  %v1191_v61 = vmul.f32 %v3114_v30, %v1190_v39  ;;  %vm1334_vm8 = vmor %vm1332_vm7, %vm1333_vm5  ;;  %v1339_v47 = vor.u32 1.1754944e-38, %v1338_v38  ;;  %v1263_v25 = vand.u32 2147483648, %v3194_v5 }
 0x4b9   : > { %v1268_v22 = vmul.f32 %v3297_v4, %v3239_v51  ;;  %v1335_v23 = vsel %vm1334_vm8, %v3197_v13, %v1331_v56  ;;  %vm1258_vm9 = vweird.f32 %v3234_v60  ;;  %v1261_v6 = vand.u32 2147483647, %v3194_v5 }
 0x4ba   : > { %v1255_v46 = vmul.f32 %v3234_v60, %v1254_v19  ;;  %1520 = vperm.xlu2 %2321, %v1191_v61   ;;  %vm1337_vm10 = vcmp.eq.f32.partialorder %v1336_v54, 8.507059e+37  ;;  %vm1257_vm11 = vweird.f32 %v3194_v5  ;;  %v1276_v27 = vand.u32 2147483647, %v3239_v51 }
 0x4bb   : > { %v1269_v30 = vsub.f32 1.0, %v1268_v22  ;;  %v1340_v20 = vsel %vm1337_vm10, %v1339_v47, %v1335_v23  ;;  %v1278_v14 = vand.u32 2147483648, %v3239_v51  ;;  %v1343_v13 = vmul.f32 %v3247_v52, %v3210_v50  ;;  %vm1259_vm12 = vmor %vm1257_vm11, %vm1258_vm9 }
 0x4bc   : > { %v1256_v35 = vadd.f32 %v3234_v60, %v1255_v46  ;;  %v3341_v57 = vmax.f32 %v3107_v62, %v3174_v59  ;;  %v1264_v8 = vor.u32 1.1754944e-38, %v1263_v25  ;;  %vm1273_vm13 = vweird.f32 %v3297_v4 }
 0x4bd   : > { %v1270_v21 = vmul.f32 %v3297_v4, %v1269_v30  ;;  %vm1262_vm15 = vcmp.eq.f32.partialorder %v1261_v6, 8.507059e+37  ;;  %vm1272_vm1 = vweird.f32 %v3239_v51  ;;  %v1344_v63 = vsub.f32 1.0, %v1343_v13 }
 0x4be   : > { %v1260_v5 = vsel %vm1259_vm12, %v3234_v60, %v1256_v35  ;;  %v1341_v28 = vmul.f32 %v3086_v16, %v1340_v20  ;;  %vm1277_vm2 = vcmp.eq.f32.partialorder %v1276_v27, 8.507059e+37  ;;  %vm1274_vm3 = vmor %vm1272_vm1, %vm1273_vm13  ;;  %v1279_v62 = vor.u32 1.1754944e-38, %v1278_v14  ;;  %v3657_v20 = vld [vmem:[#allocation14_spill] sm:$0xff] }
 0x4bf   : > { %v1265_v34 = vsel %vm1262_vm15, %v1264_v8, %v1260_v5  ;;  %v1271_v3 = vadd.f32 %v3297_v4, %v1270_v21  ;;  %v1345_v59 = vmul.f32 %v3247_v52, %v1344_v63  ;;  %vm1348_vm4 = vweird.f32 %v3247_v52  ;;  %v3658_v5 = vld [vmem:[#allocation17_spill] sm:$0xff] }
 0x4c0   : > { %v1353_v37 = vand.u32 2147483648, %v3210_v50  ;;  %1570 = vperm.xlu1 %2320, %v1341_v28   ;;  %v1266_v60 = vmul.f32 %v3126_v17, %v1265_v34  ;;  %vm1347_vm5 = vweird.f32 %v3210_v50  ;;  %v1351_v16 = vand.u32 2147483647, %v3210_v50  ;;  %v3651_v17 = vld [vmem:[#allocation18_spill] sm:$0xff] }
 0x4c1   : > { %v1275_v51 = vsel %vm1274_vm3, %v3297_v4, %v1271_v3  ;;  %v1346_v53 = vadd.f32 %v3247_v52, %v1345_v59  ;;  %v1389_v36 = vsub.f32 %v2871_v1, %v3341_v57  ;;  %v1390_v7 = vsub.f32 %v3650_v12, %v3341_v57  ;;  %vm1349_vm6 = vmor %vm1347_vm5, %vm1348_vm4 }
 0x4c2   : > { %v1280_v0 = vsel %vm1277_vm2, %v1279_v62, %v1275_v51  ;;  %1545 = vperm.xlu2 %2321, %v1266_v60   ;;  %v1391_v4 = vsub.f32 %v3651_v17, %v3341_v57  ;;  %v1392_v43 = vsub.f32 %v3652_v45, %v3341_v57  ;;  %v1354_v42 = vor.u32 1.1754944e-38, %v1353_v37  ;;  %v3659_v62 = vld [vmem:[#allocation20_spill] sm:$0xff] }
 0x4c3   : > { %v1281_v58 = vmul.f32 %v3178_v29, %v1280_v0  ;;  %v1350_v50 = vsel %vm1349_vm6, %v3247_v52, %v1346_v53  ;;  %vm1352_vm7 = vcmp.eq.f32.partialorder %v1351_v16, 8.507059e+37  ;;  %v1393_v1 = vsub.f32 %v3009_v33, %v3341_v57  ;;  %v3653_v29 = vld [vmem:[#allocation13_spill] sm:$0xff]  ;;  %v3654_v52 = vld [vmem:[#allocation16_spill] sm:$0xff]  ;;  %v3655_v33 = vld [vmem:[#allocation19_spill] sm:$0xff] }
 0x4c4   : > { %v1355_v11 = vsel %vm1352_vm7, %v1354_v42, %v1350_v50  ;;  %v1405_v24 = vmul.f32 1.442695, %v1389_v36  ;;  %v1407_v9 = vmul.f32 1.442695, %v1390_v7  ;;  %v1394_v2 = vsub.f32 %v3653_v29, %v3341_v57 }
 0x4c5   : > { %1550 = vperm.xlu0 %2322, %v1281_v58   ;;  %v1409_v55 = vmul.f32 1.442695, %v1391_v4  ;;  %v1411_v15 = vmul.f32 1.442695, %v1392_v43  ;;  %v1356_v26 = vmul.f32 %v3153_v10, %v1355_v11  ;;  %v2581_v38 = vmov 1   ;;  %v3660_v58 = vld [vmem:[#allocation23_spill] sm:$0xff] }
 0x4c6   : > { %2401 = vpow2.f32 %v1405_v24  ;;  %v1395_v18 = vsub.f32 %v3654_v52, %v3341_v57  ;;  %v1413_v32 = vmul.f32 1.442695, %v1393_v1  ;;  %v1396_v41 = vsub.f32 %v3655_v33, %v3341_v57 }
 0x4c7   : > { %2403 = vpow2.f32 %v1407_v9  ;;  %v1415_v31 = vmul.f32 1.442695, %v1394_v2  ;;  %v1397_v54 = vsub.f32 %v3656_v48, %v3341_v57  ;;  %v1398_v19 = vsub.f32 %v3027_v44, %v3341_v57 }
 0x4c8   : > { %2324 = vset.pattern.permute.xlu1 %v2581_v38  ;;  %2405 = vpow2.f32 %v1409_v55  ;;  %v1417_v10 = vmul.f32 1.442695, %v1395_v18  ;;  %v1419_v61 = vmul.f32 1.442695, %v1396_v41  ;;  %v1399_v46 = vsub.f32 %v3063_v40, %v3341_v57 }
 0x4c9   : > { %2407 = vpow2.f32 %v1411_v15  ;;  %v1421_v6 = vmul.f32 1.442695, %v1397_v54  ;;  %v1400_v35 = vsub.f32 %v3657_v20, %v3341_v57  ;;  %v1423_v14 = vmul.f32 1.442695, %v1398_v19 }
 0x4ca   : > { %1575 = vperm.xlu2 %2321, %v1356_v26   ;;  %2409 = vpow2.f32 %v1413_v32  ;;  %v1425_v40 = vmul.f32 1.442695, %v1399_v46  ;;  %v1401_v63 = vsub.f32 %v3658_v5, %v3341_v57  ;;  %v1402_v59 = vsub.f32 %v3659_v62, %v3341_v57 }
 0x4cb   : > { %2411 = vpow2.f32 %v1415_v31  ;;  %v1427_v37 = vmul.f32 1.442695, %v1400_v35  ;;  %v1403_v0 = vsub.f32 %v2986_v49, %v3341_v57  ;;  %v1404_v17 = vsub.f32 %v3660_v58, %v3341_v57 }
 0x4cc   : > { %v3378_v39 = vpop.eup %2401  ;;  %2413 = vpow2.f32 %v1417_v10  ;;  %v1429_v53 = vmul.f32 1.442695, %v1401_v63  ;;  %v1431_v4 = vmul.f32 1.442695, %v1402_v59  ;;  %vm2013_vm12 = vcmask 1042434  }
 0x4cd   : > { %2323 = vset.pattern.permute.xlu0 %v2581_v38  ;;  %v3380_v56 = vpop.eup %2403  ;;  %v1437_v47 = vsel %vm1357_vm14, %v3378_v39, 0.0  ;;  %2415 = vpow2.f32 %v1419_v61  ;;  %v1433_v49 = vmul.f32 1.442695, %v1403_v0  ;;  %v1435_v24 = vmul.f32 1.442695, %v1404_v17 }
 0x4ce   : > { %v3386_v25 = vpop.eup %2405  ;;  %v1438_v22 = vsel %vm1357_vm14, %v3380_v56, 0.0  ;;  %2417 = vpow2.f32 %v1421_v6  ;;  %vm2016_vm13 = vcmask 1043459   ;;  %vm2019_vm15 = vcmask 1044484  }
 0x4cf   : > { %v3390_v23 = vpop.eup %2407  ;;  %v1439_v30 = vadd.f32 %v1438_v22, %v1437_v47  ;;  %v1440_v44 = vsel %vm1357_vm14, %v3386_v25, 0.0  ;;  %2419 = vpow2.f32 %v1423_v14  ;;  %vm2022_vm1 = vcmask 1045509  }
 0x4d0   : > { %v3396_v27 = vpop.eup %2409  ;;  %v1442_v8 = vsel %vm1357_vm14, %v3390_v23, 0.0  ;;  %2421 = vpow2.f32 %v1425_v40  ;;  %vm2025_vm2 = vcmask 1046534   ;;  %vm2028_vm3 = vcmask 1047559  }
 0x4d1   : > { %v1441_v13 = vadd.f32 %v1440_v44, %v1439_v30  ;;  %v3402_v21 = vpop.eup %2411  ;;  %v1444_v34 = vsel %vm1357_vm14, %v3396_v27, 0.0  ;;  %2423 = vpow2.f32 %v1427_v37 }
 0x4d2   : > { %2325 = vset.pattern.permute.xlu2 %v2581_v38  ;;  %v3408_v3 = vpop.eup %2413  ;;  %v1446_v51 = vsel %vm1357_vm14, %v3402_v21, 0.0  ;;  %2425 = vpow2.f32 %v1429_v53 }
 0x4d3   : > { %v1443_v28 = vadd.f32 %v1442_v8, %v1441_v13  ;;  %v3414_v16 = vpop.eup %2415  ;;  %v1448_v12 = vsel %vm1357_vm14, %v3408_v3, 0.0  ;;  %2427 = vpow2.f32 %v1431_v4 }
 0x4d4   : > { %v3420_v7 = vpop.eup %2417  ;;  %v1450_v43 = vsel %vm1357_vm14, %v3414_v16, 0.0  ;;  %2429 = vpow2.f32 %v1433_v49 }
 0x4d5   : > { %v1445_v60 = vadd.f32 %v1444_v34, %v1443_v28  ;;  %v3426_v50 = vpop.eup %2419  ;;  %v1452_v1 = vsel %vm1357_vm14, %v3420_v7, 0.0  ;;  %2431 = vpow2.f32 %v1435_v24 }
 0x4d6   : > { %v3430_v11 = vpop.eup %2421  ;;  %v1454_v57 = vsel %vm1357_vm14, %v3426_v50, 0.0 }
 0x4d7   : > { %v1447_v36 = vadd.f32 %v1446_v51, %v1445_v60  ;;  %v3434_v29 = vpop.eup %2423  ;;  %v1456_v55 = vsel %vm1357_vm14, %v3430_v11, 0.0  ;;  %v3661_v51 = vld [vmem:[#allocation12_spill] sm:$0xff] }
 0x4d8   : > { %v2426_v15 = vpop.eup %2425  ;;  %v1458_v38 = vsel %vm1357_vm14, %v3434_v29, 0.0 }
 0x4d9   : > { %v1449_v45 = vadd.f32 %v1448_v12, %v1447_v36  ;;  %v3440_v52 = vpop.eup %2427  ;;  %v1460_v32 = vsel %vm1357_vm14, %v2426_v15, 0.0 }
 0x4da   : > { %v3443_v33 = vpop.eup %2429  ;;  %v1462_v31 = vsel %vm1357_vm14, %v3440_v52, 0.0 }
 0x4db   : > { %v1451_v42 = vadd.f32 %v1450_v43, %v1449_v45  ;;  %v2432_v48 = vpop.eup %2431  ;;  %v1464_v10 = vsel %vm1357_vm14, %v3443_v33, 0.0 }
 0x4dc   : > { %v1466_v61 = vsel %vm1357_vm14, %v2432_v48, 0.0  ;;  %vm2010_vm14 = vcmask 1041409  }
 0x4dd   : > { %v1453_v9 = vadd.f32 %v1452_v1, %v1451_v42 }
 0x4df   : > { %v1455_v2 = vadd.f32 %v1454_v57, %v1453_v9 }
 0x4e1   : > { %v1457_v26 = vadd.f32 %v1456_v55, %v1455_v2 }
 0x4e3   : > { %v1459_v18 = vadd.f32 %v1458_v38, %v1457_v26 }
 0x4e5   : > { %v1461_v41 = vadd.f32 %v1460_v32, %v1459_v18 }
 0x4e7   : > { %v1463_v54 = vadd.f32 %v1462_v31, %v1461_v41 }
 0x4e9   : > { %v1465_v19 = vadd.f32 %v1464_v10, %v1463_v54 }
 0x4eb   : > { %v1467_v47 = vadd.f32 %v1466_v61, %v1465_v19 }
 0x4ed   : > { %2433 = vrcp.f32 %v1467_v47  ;;  %v1479_v30 = vand.u32 2147483648, %v1467_v47  ;;  %v1477_v20 = vand.u32 2147483647, %v1467_v47  ;;  %vm1473_vm9 = vweird.f32 %v1467_v47 }
 0x4ef   : > { %v1480_v14 = vor.u32 1.1754944e-38, %v1479_v30  ;;  %vm1478_vm11 = vcmp.eq.f32.partialorder %v1477_v20, 8.507059e+37 }
 0x4f3   : > { %v2434_v22 = vpop.eup %2433 }
 0x4f4   : > { %v1469_v46 = vmul.f32 %v2434_v22, %v1467_v47  ;;  %vm1474_vm8 = vweird.f32 %v2434_v22 }
 0x4f5   : > { %vm1475_vm10 = vmor %vm1473_vm9, %vm1474_vm8  ;;  %v1506_v34 = vpop.permute.xlu2 %1505 }
 0x4f6   : > { %v1470_v6 = vsub.f32 1.0, %v1469_v46 }
 0x4f8   : > { %v1471_v44 = vmul.f32 %v2434_v22, %v1470_v6 }
 0x4fa   : > { %v1472_v35 = vadd.f32 %v2434_v22, %v1471_v44 }
 0x4fc   : > { %v1476_v13 = vsel %vm1475_vm10, %v2434_v22, %v1472_v35 }
 0x4fd   : > { %v1481_v8 = vsel %vm1478_vm11, %v1480_v14, %v1476_v13 }
 0x4fe   : > { %v1483_v40 = vmul.f32 %v3380_v56, %v1481_v8  ;;  %v1482_v5 = vmul.f32 %v3378_v39, %v1481_v8  ;;  %v1484_v63 = vmul.f32 %v3386_v25, %v1481_v8  ;;  %v1494_v28 = vmul.f32 %v2426_v15, %v1481_v8  ;;  %v1531_v39 = vpop.permute.xlu2 %1530 }
 0x4ff   : > { %v3453_v62 = vmul.f32 %v2432_v48, %v1481_v8  ;;  %v1485_v59 = vmul.f32 %v3390_v23, %v1481_v8  ;;  %v1487_v37 = vmul.f32 %v3402_v21, %v1481_v8  ;;  %v1486_v60 = vmul.f32 %v3396_v27, %v1481_v8 }
 0x500   : > { %1727 = vperm.xlu1 %2324, %v1483_v40   ;;  %1722 = vperm.xlu0 %2323, %v1482_v5   ;;  %v1579_v25 = vmul.f32 %v1506_v34, %v3661_v51  ;;  %v1488_v0 = vmul.f32 %v3408_v3, %v1481_v8  ;;  %v1490_v53 = vmul.f32 %v3420_v7, %v1481_v8 }
 0x501   : > { %1732 = vperm.xlu2 %2325, %v1484_v63   ;;  %v1501_v56 = vpop.permute.xlu1 %1500  ;;  %v1489_v36 = vmul.f32 %v3414_v16, %v1481_v8  ;;  %v1584_v17 = vmul.f32 %v1531_v39, %v3661_v51  ;;  %v1491_v16 = vmul.f32 %v3426_v50, %v1481_v8  ;;  %v1493_v45 = vmul.f32 %v3434_v29, %v1481_v8 }
 0x502   : > { %v1578_v12 = vmul.f32 %v1501_v56, %v3661_v51  ;;  %v1601_v27 = vsel %vm346_vm0, %v1579_v25, 0.0  ;;  %v1492_v42 = vmul.f32 %v3430_v11, %v1481_v8  ;;  %v1496_v48 = vmul.f32 %v3443_v33, %v1481_v8 }
 0x503   : > { %v1602_v4 = vrot.slane %v1601_v27, 4  ;;  %v1636_v43 = vsel %vm346_vm0, %v1584_v17, 0.0  ;;  %v1495_v10 = vmul.f32 %v3440_v52, %v1481_v8 }
 0x504   : > { %v1594_v3 = vsel %vm346_vm0, %v1578_v12, 0.0  ;;  %v1637_v2 = vrot.slane %v1636_v43, 4 }
 0x505   : > { %v1595_v49 = vrot.slane %v1594_v3, 4  ;;  %v1603_v1 = vadd.f32 %v1602_v4, %v1601_v27 }
 0x506   : > { %v3464_v21 = vpop.permute.xlu2 %1560  ;;  %v1638_v32 = vadd.f32 %v1637_v2, %v1636_v43 }
 0x507   : > { %v1596_v50 = vadd.f32 %v1595_v49, %v1594_v3  ;;  %v1604_v38 = vrot.slane %v1603_v1, 2 }
 0x508   : > { %1737 = vperm.xlu1 %2324, %v1485_v59   ;;  %1747 = vperm.xlu0 %2323, %v1487_v37   ;;  %v1639_v6 = vrot.slane %v1638_v32, 2 }
 0x509   : > { %1742 = vperm.xlu2 %2325, %v1486_v60   ;;  %v1526_v23 = vpop.permute.xlu1 %1525  ;;  %v1597_v54 = vrot.slane %v1596_v50, 2  ;;  %v1605_v47 = vadd.f32 %v1604_v38, %v1603_v1 }
 0x50a   : > { %v1583_v58 = vmul.f32 %v1526_v23, %v3661_v51  ;;  %v1640_v59 = vadd.f32 %v1639_v6, %v1638_v32 }
 0x50b   : > { %v1598_v14 = vadd.f32 %v1597_v54, %v1596_v50  ;;  %v1606_v8 = vrot.slane %v1605_v47, 1  ;;  %v2435_v50 = vld [vmem:[%s2709_s6] sm:$0xff] }
 0x50c   : > { %v1629_v7 = vsel %vm346_vm0, %v1583_v58, 0.0  ;;  %v1641_v58 = vrot.slane %v1640_v59, 1  ;;  %v1952_v32 = vrot.slane %v2435_v50, 6 }
 0x50d   : > { %v1630_v24 = vrot.slane %v1629_v7, 4  ;;  %v1599_v60 = vrot.slane %v1598_v14, 1 }
 0x50f   : > { %v1631_v18 = vadd.f32 %v1630_v24, %v1629_v7  ;;  %v1600_v3 = vadd.f32 %v1599_v60, %v1598_v14  ;;  %v1590_v14 = vmul.f32 %v3464_v21, %v3661_v51 }
 0x510   : > { %1752 = vperm.xlu1 %2324, %v1488_v0   ;;  %1762 = vperm.xlu0 %2323, %v1490_v53   ;;  %v1607_v53 = vadd.f32 %v1606_v8, %v1605_v47 }
 0x511   : > { %1757 = vperm.xlu2 %2325, %v1489_v36   ;;  %v1632_v22 = vrot.slane %v1631_v18, 2 }
 0x512   : > { %v3474_v9 = vpop.permute.xlu1 %1555 }
 0x513   : > { %v1633_v5 = vadd.f32 %v1632_v22, %v1631_v18  ;;  %v1951_v22 = vrot.slane %v2435_v50, 5 }
 0x514   : > { %v1521_v55 = vpop.permute.xlu2 %1520 }
 0x515   : > { %v1582_v29 = vmul.f32 %v1521_v55, %v3661_v51  ;;  %v1634_v36 = vrot.slane %v1633_v5, 1 }
 0x517   : > { %v1622_v11 = vsel %vm346_vm0, %v1582_v29, 0.0  ;;  %v1947_v29 = vrot.slane %v2435_v50, 1 }
 0x518   : > { %1767 = vperm.xlu1 %2324, %v1491_v16   ;;  %1777 = vperm.xlu0 %2323, %v1493_v45   ;;  %v1623_v41 = vrot.slane %v1622_v11, 4 }
 0x519   : > { %v1511_v57 = vpop.permute.xlu0 %1510  ;;  %1772 = vperm.xlu2 %2325, %v1492_v42   ;;  %v1880_v42 = vmul.f32 0.5, %v1607_v53 }
 0x51a   : > { %v1580_v15 = vmul.f32 %v1511_v57, %v3661_v51  ;;  %v1624_v19 = vadd.f32 %v1623_v41, %v1622_v11  ;;  %v1642_v57 = vadd.f32 %v1641_v58, %v1640_v59  ;;  %v1953_v59 = vrot.slane %v2435_v50, 7 }
 0x51c   : > { %v1608_v26 = vsel %vm346_vm0, %v1580_v15, 0.0  ;;  %v1625_v30 = vrot.slane %v1624_v19, 2  ;;  %v1546_v38 = vpop.permute.xlu2 %1545  ;;  %v1885_v47 = vmul.f32 0.5, %v1642_v57 }
 0x51d   : > { %v1609_v31 = vrot.slane %v1608_v26, 4  ;;  %v1587_v6 = vmul.f32 %v1546_v38, %v3661_v51 }
 0x51e   : > { %v1626_v13 = vadd.f32 %v1625_v30, %v1624_v19 }
 0x51f   : > { %v1610_v61 = vadd.f32 %v1609_v31, %v1608_v26  ;;  %v1879_v26 = vmul.f32 0.5, %v1600_v3  ;;  %v1948_v31 = vrot.slane %v2435_v50, 2 }
 0x520   : > { %1782 = vperm.xlu1 %2324, %v1494_v28   ;;  %1792 = vperm.xlu0 %2323, %v1496_v48   ;;  %v3662_v28 = vld [vmem:[#allocation10_spill] sm:$0xff]  ;;  %v1627_v25 = vrot.slane %v1626_v13, 1 }
 0x521   : > { %v1536_v46 = vpop.permute.xlu0 %1535  ;;  %1787 = vperm.xlu2 %2325, %v1495_v10   ;;  %v1611_v44 = vrot.slane %v1610_v61, 2  ;;  %v3486_v34 = vmul.f32 0.5, %v3662_v28 }
 0x522   : > { %v1585_v20 = vmul.f32 %v1536_v46, %v3661_v51  ;;  %v1516_v35 = vpop.permute.xlu1 %1515  ;;  %v1628_v43 = vadd.f32 %v1627_v25, %v1626_v13  ;;  %v1950_v46 = vrot.slane %v2435_v50, 4 }
 0x523   : > { %v1581_v33 = vmul.f32 %v1516_v35, %v3661_v51  ;;  %v1612_v40 = vadd.f32 %v1611_v44, %v1610_v61  ;;  %v1899_v27 = vrot.slane %v3486_v34, 1  ;;  %v1904_v17 = vrot.slane %v3486_v34, 6 }
 0x524   : > { %v1643_v52 = vsel %vm346_vm0, %v1585_v20, 0.0  ;;  %v1903_v16 = vrot.slane %v3486_v34, 5  ;;  %v1902_v45 = vrot.slane %v3486_v34, 4  ;;  %v1900_v2 = vrot.slane %v3486_v34, 2 }
 0x525   : > { %v1644_v63 = vrot.slane %v1643_v52, 4  ;;  %v1613_v37 = vrot.slane %v1612_v40, 1  ;;  %v1615_v39 = vsel %vm346_vm0, %v1581_v33, 0.0  ;;  %v1905_v55 = vrot.slane %v3486_v34, 7 }
 0x526   : > { %v1616_v23 = vrot.slane %v1615_v39, 4  ;;  %v1901_v15 = vrot.slane %v3486_v34, 3  ;;  %v1883_v41 = vmul.f32 0.5, %v1628_v43  ;;  %v1930_v54 = vadd.f32 %v1899_v27, %v1880_v42 }
 0x527   : > { %v1645_v56 = vadd.f32 %v1644_v63, %v1643_v52  ;;  %v1614_v0 = vadd.f32 %v1613_v37, %v1612_v40  ;;  %v1929_v30 = vadd.f32 %v3486_v34, %v1879_v26  ;;  %v1589_v44 = vmul.f32 %v3474_v9, %v3661_v51 }
 0x528   : > { %1797 = vperm.xlu1 %2324, %v3453_v62   ;;  %v1617_v7 = vadd.f32 %v1616_v23, %v1615_v39  ;;  %v1635_v62 = vadd.f32 %v1634_v36, %v1633_v5  ;;  %v1933_v33 = vadd.f32 %v1902_v45, %v1883_v41  ;;  %v1978_v52 = vadd.f32 %v1947_v29, %v1930_v54 }
 0x529   : > { %v1646_v12 = vrot.slane %v1645_v56, 2  ;;  %v1881_v49 = vmul.f32 0.5, %v1614_v0  ;;  %v1949_v5 = vrot.slane %v2435_v50, 3  ;;  %v1935_v34 = vadd.f32 %v1904_v17, %v1885_v47  ;;  %v1566_v58 = vpop.permute.xlu0 %1565 }
 0x52a   : > { %v1618_v24 = vrot.slane %v1617_v7, 2  ;;  %v1884_v10 = vmul.f32 0.5, %v1635_v62  ;;  %v1541_v61 = vpop.permute.xlu1 %1540  ;;  %v1657_v9 = vsel %vm346_vm0, %v1587_v6, 0.0  ;;  %v1977_v37 = vadd.f32 %v2435_v50, %v1929_v30  ;;  %v1576_v50 = vpop.permute.xlu2 %1575 }
 0x52b   : > { %v1647_v4 = vadd.f32 %v1646_v12, %v1645_v56  ;;  %v1931_v48 = vadd.f32 %v1900_v2, %v1881_v49  ;;  %v1586_v40 = vmul.f32 %v1541_v61, %v3661_v51  ;;  %v1671_v60 = vsel %vm346_vm0, %v1589_v44, 0.0 }
 0x52c   : > { %v1619_v11 = vadd.f32 %v1618_v24, %v1617_v7  ;;  %v1934_v8 = vadd.f32 %v1903_v16, %v1884_v10  ;;  %v1678_v39 = vsel %vm346_vm0, %v1590_v14, 0.0  ;;  %v1981_v25 = vadd.f32 %v1950_v46, %v1933_v33 }
 0x52d   : > { %v1648_v1 = vrot.slane %v1647_v4, 1  ;;  %v1979_v13 = vadd.f32 %v1948_v31, %v1931_v48  ;;  %v1650_v53 = vsel %vm346_vm0, %v1586_v40, 0.0  ;;  %v2009_v36 = vrot.slane %v1978_v52, 7 }
 0x52e   : > { %v1620_v19 = vrot.slane %v1619_v11, 1  ;;  %v1982_v12 = vadd.f32 %v1951_v22, %v1934_v8  ;;  %v1658_v23 = vrot.slane %v1657_v9, 4  ;;  %v1983_v17 = vadd.f32 %v1952_v32, %v1935_v34 }
 0x52f   : > { %v1649_v18 = vadd.f32 %v1648_v1, %v1647_v4  ;;  %v2012_v0 = vrot.slane %v1979_v13, 6  ;;  %v1672_v3 = vrot.slane %v1671_v60, 4  ;;  %v2011_v4 = vsel %vm2010_vm14, %v2009_v36, %v1977_v37 }
 0x530   : > { %v1621_v35 = vadd.f32 %v1620_v19, %v1619_v11  ;;  %v1651_v45 = vrot.slane %v1650_v53, 4  ;;  %v2018_v43 = vrot.slane %v1981_v25, 4  ;;  %v1591_v42 = vmul.f32 %v1566_v58, %v3661_v51  ;;  %v3663_v25 = vld [vmem:[#allocation11_spill] sm:$0xff] }
 0x531   : > { %v1886_v20 = vmul.f32 0.5, %v1649_v18  ;;  %v2014_v49 = vsel %vm2013_vm12, %v2012_v0, %v2011_v4  ;;  %v2021_v62 = vrot.slane %v1982_v12, 3  ;;  %v1659_v1 = vadd.f32 %v1658_v23, %v1657_v9 }
 0x532   : > { %v1882_v63 = vmul.f32 0.5, %v1621_v35  ;;  %v2024_v57 = vrot.slane %v1983_v17, 2  ;;  %v1652_v29 = vadd.f32 %v1651_v45, %v1650_v53  ;;  %v1571_v26 = vpop.permute.xlu1 %1570  ;;  %v1679_v38 = vrot.slane %v1678_v39, 4 }
 0x533   : > { %v1936_v56 = vadd.f32 %v1905_v55, %v1886_v20  ;;  %v1685_v11 = vsel %vm346_vm0, %v1591_v42, 0.0  ;;  %v1592_v32 = vmul.f32 %v1571_v26, %v3661_v51  ;;  %v1673_v41 = vadd.f32 %v1672_v3, %v1671_v60  ;;  %v2436_v42 = vld [vmem:[%s2709_s6 + $0x8] sm:$0xff] }
 0x534   : > { %v1932_v21 = vadd.f32 %v1901_v15, %v1882_v63  ;;  %v1660_v31 = vrot.slane %v1659_v1, 2  ;;  %v1593_v54 = vmul.f32 %v1576_v50, %v3661_v51  ;;  %v1686_v10 = vrot.slane %v1685_v11, 4 }
 0x535   : > { %v1984_v7 = vadd.f32 %v1953_v59, %v1936_v56  ;;  %v1653_v19 = vrot.slane %v1652_v29, 2  ;;  %v1692_v61 = vsel %vm346_vm0, %v1592_v32, 0.0  ;;  %v1680_v47 = vadd.f32 %v1679_v38, %v1678_v39 }
 0x536   : > { %v1980_v27 = vadd.f32 %v1949_v5, %v1932_v21  ;;  %v1674_v22 = vrot.slane %v1673_v41, 2  ;;  %v1661_v46 = vadd.f32 %v1660_v31, %v1659_v1  ;;  %v1699_v6 = vsel %vm346_vm0, %v1593_v54, 0.0 }
 0x537   : > { %v2027_v55 = vrot.slane %v1984_v7, 1  ;;  %v1693_v30 = vrot.slane %v1692_v61, 4  ;;  %v1687_v44 = vadd.f32 %v1686_v10, %v1685_v11  ;;  %v1654_v20 = vadd.f32 %v1653_v19, %v1652_v29  ;;  %v1551_v35 = vpop.permute.xlu0 %1550 }
 0x538   : > { %v2015_v16 = vrot.slane %v1980_v27, 5  ;;  %v1681_v14 = vrot.slane %v1680_v47, 2  ;;  %v1588_v33 = vmul.f32 %v1551_v35, %v3661_v51  ;;  %v1675_v13 = vadd.f32 %v1674_v22, %v1673_v41 }
 0x539   : > { %v1662_v40 = vrot.slane %v1661_v46, 1  ;;  %v1700_v52 = vrot.slane %v1699_v6, 4  ;;  %v1694_v8 = vadd.f32 %v1693_v30, %v1692_v61  ;;  %v1688_v63 = vrot.slane %v1687_v44, 2 }
 0x53a   : > { %v2017_v24 = vsel %vm2016_vm13, %v2015_v16, %v2014_v49  ;;  %v1664_v5 = vsel %vm346_vm0, %v1588_v33, 0.0  ;;  %v1655_v34 = vrot.slane %v1654_v20, 1  ;;  %v1682_v59 = vadd.f32 %v1681_v14, %v1680_v47 }
 0x53b   : > { %v2020_v2 = vsel %vm2019_vm15, %v2018_v43, %v2017_v24  ;;  %v1665_v9 = vrot.slane %v1664_v5, 4  ;;  %v1676_v37 = vrot.slane %v1675_v13, 1  ;;  %v1663_v60 = vadd.f32 %v1662_v40, %v1661_v46 }
 0x53c   : > { %v2023_v15 = vsel %vm2022_vm1, %v2021_v62, %v2020_v2  ;;  %v1701_v56 = vadd.f32 %v1700_v52, %v1699_v6  ;;  %v1695_v39 = vrot.slane %v1694_v8, 2  ;;  %v3539_v0 = vmul.f32 0.5, %v3663_v25 }
 0x53d   : > { %v2026_v18 = vsel %vm2025_vm2, %v2024_v57, %v2023_v15  ;;  %v1666_v21 = vadd.f32 %v1665_v9, %v1664_v5  ;;  %v1689_v53 = vadd.f32 %v1688_v63, %v1687_v44  ;;  %v1656_v36 = vadd.f32 %v1655_v34, %v1654_v20 }
 0x53e   : > { %v2029_v48 = vsel %vm2028_vm3, %v2027_v55, %v2026_v18  ;;  %v1683_v23 = vrot.slane %v1682_v59, 1  ;;  %v1677_v27 = vadd.f32 %v1676_v37, %v1675_v13  ;;  %v1888_v58 = vmul.f32 0.5, %v1663_v60 }
 0x53f   : > { %2046 = vst.msk [vmem:[%s3525_s23] sm:$0xff] %vm346_vm0, %v2029_v48  ;;  %v1667_v12 = vrot.slane %v1666_v21, 2  ;;  %v1702_v17 = vrot.slane %v1701_v56, 2  ;;  %v1696_v4 = vadd.f32 %v1695_v39, %v1694_v8  ;;  %v1906_v7 = vrot.slane %v3539_v0, 1 }
 0x540   : > { %v1690_v16 = vrot.slane %v1689_v53, 1  ;;  %v1887_v45 = vmul.f32 0.5, %v1656_v36  ;;  %v1684_v49 = vadd.f32 %v1683_v23, %v1682_v59  ;;  %v1954_v62 = vrot.slane %v2436_v42, 1 }
 0x541   : > { %v1668_v3 = vadd.f32 %v1667_v12, %v1666_v21  ;;  %v1890_v1 = vmul.f32 0.5, %v1677_v27  ;;  %v1938_v24 = vadd.f32 %v1906_v7, %v1888_v58  ;;  %v1703_v57 = vadd.f32 %v1702_v17, %v1701_v56 }
 0x542   : > { %v1908_v55 = vrot.slane %v3539_v0, 3  ;;  %v1697_v15 = vrot.slane %v1696_v4, 1  ;;  %v1907_v50 = vrot.slane %v3539_v0, 2  ;;  %v1691_v29 = vadd.f32 %v1690_v16, %v1689_v53 }
 0x543   : > { %v1669_v43 = vrot.slane %v1668_v3, 1  ;;  %v1937_v26 = vadd.f32 %v3539_v0, %v1887_v45  ;;  %v1955_v38 = vrot.slane %v2436_v42, 2  ;;  %v1891_v11 = vmul.f32 0.5, %v1684_v49 }
 0x544   : > { %v1956_v32 = vrot.slane %v2436_v42, 3  ;;  %v1940_v41 = vadd.f32 %v1908_v55, %v1890_v1  ;;  %v1986_v31 = vadd.f32 %v1954_v62, %v1938_v24  ;;  %v1704_v48 = vrot.slane %v1703_v57, 1 }
 0x545   : > { %v1670_v2 = vadd.f32 %v1669_v43, %v1668_v3  ;;  %v1909_v10 = vrot.slane %v3539_v0, 4  ;;  %v1698_v19 = vadd.f32 %v1697_v15, %v1696_v4  ;;  %v1892_v61 = vmul.f32 0.5, %v1691_v29 }
 0x546   : > { %v1985_v47 = vadd.f32 %v2436_v42, %v1937_v26  ;;  %v1957_v46 = vrot.slane %v2436_v42, 4  ;;  %v1910_v30 = vrot.slane %v3539_v0, 5  ;;  %v1988_v44 = vadd.f32 %v1956_v32, %v1940_v41 }
 0x547   : > { %v1889_v18 = vmul.f32 0.5, %v1670_v2  ;;  %v1941_v6 = vadd.f32 %v1909_v10, %v1891_v11  ;;  %v2030_v20 = vrot.slane %v1986_v31, 7  ;;  %v1705_v35 = vadd.f32 %v1704_v48, %v1703_v57 }
 0x548   : > { %v1893_v33 = vmul.f32 0.5, %v1698_v19  ;;  %v1958_v13 = vrot.slane %v2436_v42, 5  ;;  %v1942_v40 = vadd.f32 %v1910_v30, %v1892_v61  ;;  %v1911_v5 = vrot.slane %v3539_v0, 6 }
 0x549   : > { %v1939_v54 = vadd.f32 %v1907_v50, %v1889_v18  ;;  %v2031_v52 = vsel %vm2010_vm14, %v2030_v20, %v1985_v47  ;;  %v1989_v8 = vadd.f32 %v1957_v46, %v1941_v6  ;;  %v2034_v34 = vrot.slane %v1988_v44, 5 }
 0x54a   : > { %v1894_v9 = vmul.f32 0.5, %v1705_v35  ;;  %v1959_v59 = vrot.slane %v2436_v42, 6  ;;  %v1943_v37 = vadd.f32 %v1911_v5, %v1893_v33  ;;  %v1912_v60 = vrot.slane %v3539_v0, 7 }
 0x54b   : > { %v1987_v22 = vadd.f32 %v1955_v38, %v1939_v54  ;;  %v1990_v56 = vadd.f32 %v1958_v13, %v1942_v40  ;;  %v2036_v39 = vrot.slane %v1989_v8, 4  ;;  %v1960_v53 = vrot.slane %v2436_v42, 7 }
 0x54c   : > { %v1944_v36 = vadd.f32 %v1912_v60, %v1894_v9  ;;  %v1991_v12 = vadd.f32 %v1959_v59, %v1943_v37  ;;  %v1706_v0 = vrot.slane %v3662_v28, 1  ;;  %v1707_v43 = vrot.slane %v3662_v28, 2 }
 0x54d   : > { %v2032_v14 = vrot.slane %v1987_v22, 6  ;;  %v2038_v27 = vrot.slane %v1990_v56, 3  ;;  %v1800_v62 = vperm.slane %v3662_v28, 0  ;;  %v1709_v55 = vrot.slane %v3662_v28, 4 }
 0x54e   : > { %v1992_v17 = vadd.f32 %v1960_v53, %v1944_v36  ;;  %v2040_v4 = vrot.slane %v1991_v12, 2  ;;  %v1801_v42 = vperm.slane %v1706_v0, 0  ;;  %v1802_v15 = vperm.slane %v1707_v43, 0 }
 0x54f   : > { %v2033_v63 = vsel %vm2013_vm12, %v2032_v14, %v2031_v52  ;;  %v1708_v26 = vrot.slane %v3662_v28, 3  ;;  %v1804_v11 = vperm.slane %v1709_v55, 0  ;;  %v1710_v41 = vrot.slane %v3662_v28, 5 }
 0x550   : > { %v2035_v21 = vsel %vm2016_vm13, %v2034_v34, %v2033_v63  ;;  %v2042_v16 = vrot.slane %v1992_v17, 1  ;;  %v1712_v22 = vrot.slane %v3662_v28, 7  ;;  %v1711_v30 = vrot.slane %v3662_v28, 6 }
 0x551   : > { %v2037_v23 = vsel %vm2019_vm15, %v2036_v39, %v2035_v21  ;;  %v1803_v32 = vperm.slane %v1708_v26, 0  ;;  %v1805_v6 = vperm.slane %v1710_v41, 0  ;;  %v1714_v9 = vrot.slane %v3663_v25, 2 }
 0x552   : > { %v2039_v3 = vsel %vm2022_vm1, %v2038_v27, %v2037_v23  ;;  %v1807_v33 = vperm.slane %v1712_v22, 0  ;;  %v1806_v13 = vperm.slane %v1711_v30, 0  ;;  %v1808_v28 = vperm.slane %v3663_v25, 0 }
 0x553   : > { %v2041_v7 = vsel %vm2025_vm2, %v2040_v4, %v2039_v3  ;;  %v1713_v37 = vrot.slane %v3663_v25, 1  ;;  %v1810_v36 = vperm.slane %v1714_v9, 0  ;;  %v1715_v23 = vrot.slane %v3663_v25, 3 }
 0x554   : > { %v2043_v45 = vsel %vm2028_vm3, %v2042_v16, %v2041_v7  ;;  %v1717_v16 = vrot.slane %v3663_v25, 5  ;;  %v1716_v43 = vrot.slane %v3663_v25, 4  ;;  %v1718_v55 = vrot.slane %v3663_v25, 6 }
 0x555   : > { %2047 = vst.msk [vmem:[%s3525_s23 + $0x8] sm:$0xff] %vm346_vm0, %v2043_v45  ;;  %v1809_v12 = vperm.slane %v1713_v37, 0  ;;  %v1811_v45 = vperm.slane %v1715_v23, 0  ;;  %v1719_v41 = vrot.slane %v3663_v25, 7  ;;  %v2437_v25 = vld [vmem:[%s2716_s8] sm:$0xff] }
 0x55b   : > { %v1733_v58 = vpop.permute.xlu2 %1732 }
 0x55c   : > { %v1834_v38 = vmul.f32 %v1802_v15, %v1733_v58 }
 0x55e   : > { %v1851_v54 = vsel %vm346_vm0, %v1834_v38, 0.0 }
 0x563   : > { %v1743_v49 = vpop.permute.xlu2 %1742 }
 0x564   : > { %v1836_v10 = vmul.f32 %v1804_v11, %v1743_v49 }
 0x566   : > { %v1855_v20 = vsel %vm346_vm0, %v1836_v10, 0.0 }
 0x56b   : > { %v1758_v61 = vpop.permute.xlu2 %1757 }
 0x56c   : > { %v1839_v8 = vmul.f32 %v1807_v33, %v1758_v61 }
 0x56e   : > { %v1861_v21 = vsel %vm346_vm0, %v1839_v8, 0.0 }
 0x572   : > { %v1728_v1 = vpop.permute.xlu1 %1727  ;;  %v1723_v24 = vpop.permute.xlu0 %1722 }
 0x573   : > { %v1833_v57 = vmul.f32 %v1801_v42, %v1728_v1  ;;  %v1832_v2 = vmul.f32 %v1800_v62, %v1723_v24  ;;  %v1773_v60 = vpop.permute.xlu2 %1772 }
 0x574   : > { %v1842_v17 = vmul.f32 %v1810_v36, %v1773_v60 }
 0x575   : > { %v1849_v50 = vsel %vm346_vm0, %v1833_v57, 0.0  ;;  %v1848_v29 = vsel %vm346_vm0, %v1832_v2, 0.0  ;;  %v1813_v57 = vperm.slane %v1717_v16, 0  ;;  %v1812_v2 = vperm.slane %v1716_v43, 0 }
 0x576   : > { %v1850_v18 = vadd.f32 %v1849_v50, %v1848_v29  ;;  %v1867_v42 = vsel %vm346_vm0, %v1842_v17, 0.0 }
 0x578   : > { %v1852_v47 = vadd.f32 %v1851_v54, %v1850_v18 }
 0x57a   : > { %v1738_v31 = vpop.permute.xlu1 %1737  ;;  %v1748_v48 = vpop.permute.xlu0 %1747 }
 0x57b   : > { %v1835_v19 = vmul.f32 %v1803_v32, %v1738_v31  ;;  %v1837_v35 = vmul.f32 %v1805_v6, %v1748_v48  ;;  %v1788_v1 = vpop.permute.xlu2 %1787  ;;  %v1814_v32 = vperm.slane %v1718_v55, 0 }
 0x57c   : > { %v1845_v50 = vmul.f32 %v1813_v57, %v1788_v1 }
 0x57d   : > { %v1853_v46 = vsel %vm346_vm0, %v1835_v19, 0.0  ;;  %v1857_v5 = vsel %vm346_vm0, %v1837_v35, 0.0  ;;  %v1815_v19 = vperm.slane %v1719_v41, 0 }
 0x57e   : > { %v1854_v44 = vadd.f32 %v1853_v46, %v1852_v47  ;;  %v1873_v48 = vsel %vm346_vm0, %v1845_v50, 0.0 }
 0x580   : > { %v1856_v14 = vadd.f32 %v1855_v20, %v1854_v44  ;;  %v2049_v44 = vmul.f32 0.5, %v3661_v51 }
 0x582   : > { %v1753_v40 = vpop.permute.xlu1 %1752  ;;  %v1763_v52 = vpop.permute.xlu0 %1762  ;;  %v1858_v34 = vadd.f32 %v1857_v5, %v1856_v14 }
 0x583   : > { %v1838_v63 = vmul.f32 %v1806_v13, %v1753_v40  ;;  %v1840_v39 = vmul.f32 %v1808_v28, %v1763_v52 }
 0x585   : > { %v1859_v59 = vsel %vm346_vm0, %v1838_v63, 0.0  ;;  %v1863_v3 = vsel %vm346_vm0, %v1840_v39, 0.0 }
 0x586   : > { %v1860_v56 = vadd.f32 %v1859_v59, %v1858_v34 }
 0x588   : > { %v1862_v53 = vadd.f32 %v1861_v21, %v1860_v56 }
 0x58a   : > { %v1768_v27 = vpop.permute.xlu1 %1767  ;;  %v1778_v58 = vpop.permute.xlu0 %1777  ;;  %v1864_v7 = vadd.f32 %v1863_v3, %v1862_v53 }
 0x58b   : > { %v1841_v4 = vmul.f32 %v1809_v12, %v1768_v27  ;;  %v1843_v62 = vmul.f32 %v1811_v45, %v1778_v58 }
 0x58d   : > { %v1865_v0 = vsel %vm346_vm0, %v1841_v4, 0.0  ;;  %v1869_v29 = vsel %vm346_vm0, %v1843_v62, 0.0 }
 0x58e   : > { %v1866_v49 = vadd.f32 %v1865_v0, %v1864_v7 }
 0x590   : > { %v1868_v24 = vadd.f32 %v1867_v42, %v1866_v49 }
 0x592   : > { %v1783_v15 = vpop.permute.xlu1 %1782  ;;  %v1870_v38 = vadd.f32 %v1869_v29, %v1868_v24  ;;  %v1793_v18 = vpop.permute.xlu0 %1792 }
 0x593   : > { %v1844_v26 = vmul.f32 %v1812_v2, %v1783_v15  ;;  %v1846_v54 = vmul.f32 %v1814_v32, %v1793_v18 }
 0x595   : > { %v1871_v11 = vsel %vm346_vm0, %v1844_v26, 0.0  ;;  %v1875_v47 = vsel %vm346_vm0, %v1846_v54, 0.0 }
 0x596   : > { %v1872_v31 = vadd.f32 %v1871_v11, %v1870_v38 }
 0x598   : > { %v1874_v10 = vadd.f32 %v1873_v48, %v1872_v31 }
 0x59a   : > { %v1798_v61 = vpop.permute.xlu1 %1797  ;;  %v1876_v46 = vadd.f32 %v1875_v47, %v1874_v10 }
 0x59b   : > { %v1847_v22 = vmul.f32 %v1815_v19, %v1798_v61 }
 0x59d   : > { %v1877_v6 = vsel %vm346_vm0, %v1847_v22, 0.0 }
 0x59e   : > { %v1878_v30 = vadd.f32 %v1877_v6, %v1876_v46 }
 0x5a0   : > { %v2048_v20 = vmul.f32 0.5, %v1878_v30 }
 0x5a2   : > { %v2050_v35 = vadd.f32 %v2049_v44, %v2048_v20 }
 0x5a4   : > { %v2051_v14 = vadd.f32 %v2437_v25, %v2050_v35 }
 0x5a6   : > { %2052 = vst.msk [vmem:[%s3525_s23 + $0x10] sm:$0xff] %vm346_vm0, %v2051_v14 }
 0x5a7 PF: > { %p16_p4 = scmp.ge.s32.totalorder %s2645_s24, 6   ;;  %s3664_s12 = smov %s2562_s13 }
 0x5a8   : > { %s3665_s13 = smov %s2566_s14  ;;  %s3666_s14 = smov %s2658_s29 }
 0x5a9   : > { %s3667_s15 = smov %s2645_s24  ;;  %18 = sbr.rel (!%p16_p4) target bundleno = 5 (0x5), region = 89 }
 0x5ae   :  { %2074 = vsyncpa [#allocation3], 1 }
 0x5af   :  { %2076 = vsyncpa [#allocation3 + $0x1], 1 }
 0x5b0   :  { %2077 = vsyncpa [#allocation5], 1 }
 0x5b1   :  { %2079 = vsyncpa [#allocation5 + $0x1], 1 }

</bundles_post_ra>
